<compile_context>
chip_gen: v5e
topology: v5e:2x2
jax: 0.10.0
libtpu: 0.0.40
codegen_flags: <defaults>
</compile_context>

<pallas_src>
import functools

import jax
import jax.numpy as jnp
from jax import lax
from jax.experimental import pallas as pl
from jax.experimental.pallas import tpu as pltpu


# ---------------------------------------------------------------------------
# BlurLayer kernel: fixed depthwise 3x3 blur [[1,2,1],[2,4,2],[1,2,1]]/16, padding=1,
# optionally fused with the 2x2 / stride-2 max-pool that follows it in the model.
# ---------------------------------------------------------------------------

_BLUR_W = ((1.0, 2.0, 1.0), (2.0, 4.0, 2.0), (1.0, 2.0, 1.0))
_BLUR_SUM = 16.0


def _blur_kernel(x_ref, o_ref, pad_ref, *, pool):
    """Separable [1,2,1]x[1,2,1]/16 blur on a channels-last block.

    x_ref:   (TB, H, W, C)   input block (C on the 128-lane axis -> lane-dense)
    o_ref:   (TB, H, W, C)   if pool=False, else (TB, H//2, W//2, C)
    pad_ref: (TB, H, W+2, C) f32 scratch with a 1-column zero halo on each W side
    """
    TB, H, W, C = x_ref.shape
    inv = 1.0 / _BLUR_SUM

    # Zero ONLY the two W-halo columns; the interior is overwritten right below.
    # Done every grid step (scratch is per-core & uninitialized) -- do NOT gate on
    # program_id==0 under dimension_semantics=("parallel",).
    zcol = jnp.zeros((TB, H, 1, C), jnp.float32)
    pad_ref[:, :, 0:1, :] = zcol
    pad_ref[:, :, W + 1:W + 2, :] = zcol

    # Single interior copy so pass 1 can read the W halo with cheap ref slices.
    pad_ref[:, :, 1:W + 1, :] = x_ref[...].astype(jnp.float32)

    # Pass 1: [1, 2, 1] along W (sublane axis; lanes = C untouched). `row` stays a
    # value -> no write-back store.
    row = (pad_ref[:, :, 0:W, :]
           + 2.0 * pad_ref[:, :, 1:W + 1, :]
           + pad_ref[:, :, 2:W + 2, :])

    # Pass 2: [1, 2, 1] along H (outer axis) on the value. Edge rows use the 2-tap
    # form, which is identical to reading a zero halo row.
    top = (2.0 * row[:, 0:1] + row[:, 1:2]) * inv
    bot = (row[:, H - 2:H - 1] + 2.0 * row[:, H - 1:H]) * inv
    mid = None
    if H > 2:
        mid = (row[:, 0:H - 2] + 2.0 * row[:, 1:H - 1] + row[:, 2:H]) * inv

    if not pool:
        o_ref[:, 0:1, :, :] = top.astype(o_ref.dtype)
        if mid is not None:
            o_ref[:, 1:H - 1, :, :] = mid.astype(o_ref.dtype)
        o_ref[:, H - 1:H, :, :] = bot.astype(o_ref.dtype)
    else:
        # Write the blurred map back into the pad-scratch interior (pass 1 has already
        # consumed the input copy), then 2x2 max-pool straight from VMEM.
        pad_ref[:, 0:1, 1:W + 1, :] = top
        if mid is not None:
            pad_ref[:, 1:H - 1, 1:W + 1, :] = mid
        pad_ref[:, H - 1:H, 1:W + 1, :] = bot

        Hp, Wp = H // 2, W // 2
        # W-direction pool via sublane-strided reads (even / odd blurred columns).
        wa = pad_ref[:, :, pl.ds(1, Wp, stride=2), :]
        wb = pad_ref[:, :, pl.ds(2, Wp, stride=2), :]
        wm = jnp.maximum(wa, wb)                              # (TB, H, Wp, C)
        # H-direction pool: leading-dim-only reshape, then elementwise max.
        wm = wm.reshape(TB * Hp, 2, Wp, C)
        pooled = jnp.maximum(wm[:, 0], wm[:, 1])              # (TB*Hp, Wp, C)
        o_ref[...] = pooled.reshape(TB, Hp, Wp, C).astype(o_ref.dtype)


def _vmem_plan(B, H, W, C, in_itemsize, out_itemsize, pooled):
    """Pick (batch_tile, vmem_limit_bytes) for the blur / blur+pool kernel."""
    Hp, Wp = (H // 2, W // 2) if pooled else (H, W)
    per_img = (2 * H * W * C * in_itemsize            # input block, double-buffered
               + 2 * Hp * Wp * C * out_itemsize       # output block, double-buffered
               + H * (W + 2) * C * 4)                 # f32 pad scratch

    # Generation-aware budget: v7x has 64 MiB VMEM / 2 TensorCores; v5e/v6e have
    # 128 MiB and a single TensorCore (so no point forcing >=2 grid steps there).
    try:
        vmem_cap = int(pltpu.get_tpu_info().vmem_capacity_bytes)
    except Exception:
        vmem_cap = 0
    if vmem_cap >= (100 << 20):          # v5e / v6e class
        budget, vmem_limit, want_two_steps = 40 << 20, 64 << 20, False
    elif vmem_cap > 0:                   # v7x class (smaller VMEM, 2 cores)
        budget, vmem_limit, want_two_steps = 20 << 20, 32 << 20, True
    else:                                # unknown backend: stay conservative
        budget, vmem_limit, want_two_steps = 16 << 20, 32 << 20, True

    # Tiny problems: one fat grid step beats splitting (per-step overhead ~0.35 us;
    # the grid is a sequential loop per core, not a GPU-style launch).
    if B * per_img <= (1 << 20):
        want_two_steps = False

    cap = max(1, budget // per_img)
    if want_two_steps and B > 1:
        cap = min(cap, max(1, B // 2))
    # TODO(synk): for very large H*W*C a single image can exceed the budget; add H
    # tiling (row blocks with a 1-row halo) instead of flooring at batch-tile 1.
    tb = 1
    for d in range(1, B + 1):
        if B % d == 0 and d <= cap:
            tb = d
    return tb, vmem_limit


def blur_nhwc(x):
    """Fixed 3x3 blur (padding=1) on a channels-last tensor (B, H, W, C)."""
    B, H, W, C = x.shape
    assert H >= 2, "blur kernel expects H >= 2"
    tb, vmem_limit = _vmem_plan(B, H, W, C, x.dtype.itemsize, x.dtype.itemsize, False)
    return pl.pallas_call(
        functools.partial(_blur_kernel, pool=False),
        out_shape=jax.ShapeDtypeStruct((B, H, W, C), x.dtype),
        grid_spec=pltpu.PrefetchScalarGridSpec(
            num_scalar_prefetch=0,
            grid=(B // tb,),
            in_specs=[pl.BlockSpec((tb, H, W, C), lambda i: (i, 0, 0, 0))],
            out_specs=pl.BlockSpec((tb, H, W, C), lambda i: (i, 0, 0, 0)),
            scratch_shapes=[pltpu.VMEM((tb, H, W + 2, C), jnp.float32)],
        ),
        compiler_params=pltpu.CompilerParams(
            dimension_semantics=("parallel",), vmem_limit_bytes=vmem_limit),
    )(x)


def blur_maxpool_nhwc(x):
    """Fused fixed 3x3 blur (padding=1) + 2x2/stride-2 max-pool, channels-last."""
    B, H, W, C = x.shape
    assert H >= 2 and W >= 2 and H % 2 == 0 and W % 2 == 0
    tb, vmem_limit = _vmem_plan(B, H, W, C, x.dtype.itemsize, x.dtype.itemsize, True)
    return pl.pallas_call(
        functools.partial(_blur_kernel, pool=True),
        out_shape=jax.ShapeDtypeStruct((B, H // 2, W // 2, C), x.dtype),
        grid_spec=pltpu.PrefetchScalarGridSpec(
            num_scalar_prefetch=0,
            grid=(B // tb,),
            in_specs=[pl.BlockSpec((tb, H, W, C), lambda i: (i, 0, 0, 0))],
            out_specs=pl.BlockSpec((tb, H // 2, W // 2, C), lambda i: (i, 0, 0, 0)),
            scratch_shapes=[pltpu.VMEM((tb, H, W + 2, C), jnp.float32)],
        ),
        compiler_params=pltpu.CompilerParams(
            dimension_semantics=("parallel",), vmem_limit_bytes=vmem_limit),
    )(x)


def blur_layer(x):
    """PyTorch-layout entry point: x is NCHW (B, C, H, W), like BlurLayer.forward."""
    y = blur_nhwc(jnp.transpose(x, (0, 2, 3, 1)))
    return jnp.transpose(y, (0, 3, 1, 2))


# ---------------------------------------------------------------------------
# ModifiedVGG8 forward. Activations stay channels-last (NHWC) between layers so the
# Pallas blur+pool kernel is lane-dense with no transposes in the hot path.
# ---------------------------------------------------------------------------

_VGG_CHANNELS = (1, 64, 128, 256, 512)


def init_vgg8_params(key, dtype=jnp.float32):
    params = []
    for cin, cout in zip(_VGG_CHANNELS[:-1], _VGG_CHANNELS[1:]):
        key, kw, kb = jax.random.split(key, 3)
        scale = 1.0 / float(9 * cin) ** 0.5
        w = jax.random.normal(kw, (3, 3, cin, cout), dtype) * scale   # HWIO
        b = 0.01 * jax.random.normal(kb, (cout,), dtype)
        params.append((w, b))
    return params


def modified_vgg8_forward(x_nchw, params, *, use_pallas=True):
    """Forward pass of ModifiedVGG8. x_nchw: (B, 1, H, W). Returns NCHW features."""
    x = jnp.transpose(x_nchw, (0, 2, 3, 1))                      # -> NHWC
    for w, b in params:
        x = lax.conv_general_dilated(
            x, w, window_strides=(1, 1), padding=((1, 1), (1, 1)),
            dimension_numbers=("NHWC", "HWIO", "NHWC"))
        x = jax.nn.gelu(x + b, approximate=False)                # exact GELU (torch default)
        if use_pallas:
            x = blur_maxpool_nhwc(x)                             # fused Pallas blur + 2x2 maxpool
        else:
            x = _reference_blur_nhwc(x)
            x = lax.reduce_window(x, -jnp.inf, lax.max,
                                  (1, 2, 2, 1), (1, 2, 2, 1), "VALID")
    return jnp.transpose(x, (0, 3, 1, 2))                        # -> NCHW


# ---------------------------------------------------------------------------
# Pure-JAX reference blur (9-tap) for correctness checks.
# ---------------------------------------------------------------------------

def _reference_blur_nhwc(x):
    B, H, W, C = x.shape
    xp = jnp.pad(x.astype(jnp.float32), ((0, 0), (1, 1), (1, 1), (0, 0)))
    acc = jnp.zeros((B, H, W, C), jnp.float32)
    for di in range(3):
        for dj in range(3):
            acc = acc + _BLUR_W[di][dj] * xp[:, di:di + H, dj:dj + W, :]
    return (acc / _BLUR_SUM).astype(x.dtype)


if __name__ == "__main__":
    key = jax.random.PRNGKey(0)
    k_x, k_blur, k_params = jax.random.split(key, 3)

    # 1) Standalone BlurLayer check (NCHW API, like the PyTorch module).
    xb = jax.random.normal(k_blur, (2, 4, 16, 16), dtype=jnp.float32)
    yb = jax.block_until_ready(blur_layer(xb))
    yb_ref = jnp.transpose(
        _reference_blur_nhwc(jnp.transpose(xb, (0, 2, 3, 1))), (0, 3, 1, 2))
    assert yb.shape == xb.shape
    assert jnp.allclose(yb, yb_ref, atol=1e-5, rtol=1e-5)

    # 2) Fused blur + 2x2 maxpool kernel check on a lane-dense channel count.
    xf = jax.random.normal(k_blur, (2, 16, 16, 128), dtype=jnp.float32)
    yf = jax.block_until_ready(blur_maxpool_nhwc(xf))
    yf_ref = lax.reduce_window(_reference_blur_nhwc(xf), -jnp.inf, lax.max,
                               (1, 2, 2, 1), (1, 2, 2, 1), "VALID")
    assert yf.shape == (2, 8, 8, 128)
    assert jnp.allclose(yf, yf_ref, atol=1e-5, rtol=1e-5)

    # 3) Full ModifiedVGG8 forward: (2, 1, 16, 16) -> (2, 512, 1, 1).
    x = jax.random.normal(k_x, (2, 1, 16, 16), dtype=jnp.float32)
    params = init_vgg8_params(k_params)

    fwd = jax.jit(functools.partial(modified_vgg8_forward, use_pallas=True))
    y = jax.block_until_ready(fwd(x, params))
    assert y.shape == (2, 512, 1, 1)

    # End-to-end check against the same network using the pure-JAX reference blur/pool.
    y_ref = modified_vgg8_forward(x, params, use_pallas=False)
    assert jnp.allclose(y, y_ref, atol=1e-4, rtol=1e-4)

    print("KERNEL_OK")
</pallas_src>

<mosaic_0001>
module attributes {stable_mosaic.version = 11 : i64} {
  func.func @_blur_kernel(%arg0: i32, %arg1: memref<2x16x16x4xf32, #tpu.memory_space<vmem>>, %arg2: memref<2x16x16x4xf32, #tpu.memory_space<vmem>>, %arg3: memref<2x16x18x4xf32, #tpu.memory_space<vmem>>) attributes {dimension_semantics = [#tpu.dimension_semantics<parallel>], iteration_bounds = array<i64: 1>, scalar_prefetch = 0 : i64, scratch_operands = 1 : i64, tpu.core_type = #tpu.core_type<tc>, window_params = [{transform_indices = @transform_0, window_bounds = array<i64: 2, 16, 16, 4>}, {transform_indices = @transform_1, window_bounds = array<i64: 2, 16, 16, 4>}]} {
    %cst = arith.constant 0.000000e+00 : f32
    %0 = vector.broadcast %cst : f32 to vector<2x16x1x4xf32>
    %c0 = arith.constant 0 : index
    %c0_0 = arith.constant 0 : index
    %c0_1 = arith.constant 0 : index
    %c0_2 = arith.constant 0 : index
    %1 = vector.load %arg3[%c0, %c0_0, %c0_1, %c0_2] : memref<2x16x18x4xf32, #tpu.memory_space<vmem>>, vector<2x16x1x4xf32>
    tpu.vector_store %arg3[%c0, %c0_0, %c0_1, %c0_2], %0 {strides = array<i32>} : memref<2x16x18x4xf32, #tpu.memory_space<vmem>>, vector<2x16x1x4xf32>,
    %c0_3 = arith.constant 0 : index
    %c0_4 = arith.constant 0 : index
    %c17 = arith.constant 17 : index
    %c0_5 = arith.constant 0 : index
    %2 = vector.load %arg3[%c0_3, %c0_4, %c17, %c0_5] : memref<2x16x18x4xf32, #tpu.memory_space<vmem>>, vector<2x16x1x4xf32>
    tpu.vector_store %arg3[%c0_3, %c0_4, %c17, %c0_5], %0 {strides = array<i32>} : memref<2x16x18x4xf32, #tpu.memory_space<vmem>>, vector<2x16x1x4xf32>,
    %c0_6 = arith.constant 0 : index
    %c0_7 = arith.constant 0 : index
    %c0_8 = arith.constant 0 : index
    %c0_9 = arith.constant 0 : index
    %3 = vector.load %arg1[%c0_6, %c0_7, %c0_8, %c0_9] : memref<2x16x16x4xf32, #tpu.memory_space<vmem>>, vector<2x16x16x4xf32>
    %c0_10 = arith.constant 0 : index
    %c0_11 = arith.constant 0 : index
    %c1 = arith.constant 1 : index
    %c0_12 = arith.constant 0 : index
    %4 = vector.load %arg3[%c0_10, %c0_11, %c1, %c0_12] : memref<2x16x18x4xf32, #tpu.memory_space<vmem>>, vector<2x16x16x4xf32>
    tpu.vector_store %arg3[%c0_10, %c0_11, %c1, %c0_12], %3 {strides = array<i32>} : memref<2x16x18x4xf32, #tpu.memory_space<vmem>>, vector<2x16x16x4xf32>,
    %c0_13 = arith.constant 0 : index
    %c0_14 = arith.constant 0 : index
    %c0_15 = arith.constant 0 : index
    %c0_16 = arith.constant 0 : index
    %5 = vector.load %arg3[%c0_13, %c0_14, %c0_15, %c0_16] : memref<2x16x18x4xf32, #tpu.memory_space<vmem>>, vector<2x16x16x4xf32>
    %c0_17 = arith.constant 0 : index
    %c0_18 = arith.constant 0 : index
    %c1_19 = arith.constant 1 : index
    %c0_20 = arith.constant 0 : index
    %6 = vector.load %arg3[%c0_17, %c0_18, %c1_19, %c0_20] : memref<2x16x18x4xf32, #tpu.memory_space<vmem>>, vector<2x16x16x4xf32>
    %cst_21 = arith.constant 2.000000e+00 : f32
    %7 = vector.broadcast %cst_21 : f32 to vector<2x16x16x4xf32>
    %8 = arith.mulf %7, %6 : vector<2x16x16x4xf32>
    %9 = arith.addf %5, %8 : vector<2x16x16x4xf32>
    %c0_22 = arith.constant 0 : index
    %c0_23 = arith.constant 0 : index
    %c2 = arith.constant 2 : index
    %c0_24 = arith.constant 0 : index
    %10 = vector.load %arg3[%c0_22, %c0_23, %c2, %c0_24] : memref<2x16x18x4xf32, #tpu.memory_space<vmem>>, vector<2x16x16x4xf32>
    %11 = arith.addf %9, %10 : vector<2x16x16x4xf32>
    %12 = vector.extract_strided_slice %11 {offsets = [0, 0, 0, 0], sizes = [2, 1, 16, 4], strides = [1, 1, 1, 1]} : vector<2x16x16x4xf32> to vector<2x1x16x4xf32>
    %cst_25 = arith.constant 2.000000e+00 : f32
    %13 = vector.broadcast %cst_25 : f32 to vector<2x1x16x4xf32>
    %14 = arith.mulf %13, %12 : vector<2x1x16x4xf32>
    %15 = vector.extract_strided_slice %11 {offsets = [0, 1, 0, 0], sizes = [2, 1, 16, 4], strides = [1, 1, 1, 1]} : vector<2x16x16x4xf32> to vector<2x1x16x4xf32>
    %16 = arith.addf %14, %15 : vector<2x1x16x4xf32>
    %cst_26 = arith.constant 6.250000e-02 : f32
    %17 = vector.broadcast %cst_26 : f32 to vector<2x1x16x4xf32>
    %18 = arith.mulf %16, %17 : vector<2x1x16x4xf32>
    %19 = vector.extract_strided_slice %11 {offsets = [0, 14, 0, 0], sizes = [2, 1, 16, 4], strides = [1, 1, 1, 1]} : vector<2x16x16x4xf32> to vector<2x1x16x4xf32>
    %20 = vector.extract_strided_slice %11 {offsets = [0, 15, 0, 0], sizes = [2, 1, 16, 4], strides = [1, 1, 1, 1]} : vector<2x16x16x4xf32> to vector<2x1x16x4xf32>
    %cst_27 = arith.constant 2.000000e+00 : f32
    %21 = vector.broadcast %cst_27 : f32 to vector<2x1x16x4xf32>
    %22 = arith.mulf %21, %20 : vector<2x1x16x4xf32>
    %23 = arith.addf %19, %22 : vector<2x1x16x4xf32>
    %cst_28 = arith.constant 6.250000e-02 : f32
    %24 = vector.broadcast %cst_28 : f32 to vector<2x1x16x4xf32>
    %25 = arith.mulf %23, %24 : vector<2x1x16x4xf32>
    %26 = vector.extract_strided_slice %11 {offsets = [0, 0, 0, 0], sizes = [2, 14, 16, 4], strides = [1, 1, 1, 1]} : vector<2x16x16x4xf32> to vector<2x14x16x4xf32>
    %27 = vector.extract_strided_slice %11 {offsets = [0, 1, 0, 0], sizes = [2, 14, 16, 4], strides = [1, 1, 1, 1]} : vector<2x16x16x4xf32> to vector<2x14x16x4xf32>
    %cst_29 = arith.constant 2.000000e+00 : f32
    %28 = vector.broadcast %cst_29 : f32 to vector<2x14x16x4xf32>
    %29 = arith.mulf %28, %27 : vector<2x14x16x4xf32>
    %30 = arith.addf %26, %29 : vector<2x14x16x4xf32>
    %31 = vector.extract_strided_slice %11 {offsets = [0, 2, 0, 0], sizes = [2, 14, 16, 4], strides = [1, 1, 1, 1]} : vector<2x16x16x4xf32> to vector<2x14x16x4xf32>
    %32 = arith.addf %30, %31 : vector<2x14x16x4xf32>
    %cst_30 = arith.constant 6.250000e-02 : f32
    %33 = vector.broadcast %cst_30 : f32 to vector<2x14x16x4xf32>
    %34 = arith.mulf %32, %33 : vector<2x14x16x4xf32>
    %c0_31 = arith.constant 0 : index
    %c0_32 = arith.constant 0 : index
    %c0_33 = arith.constant 0 : index
    %c0_34 = arith.constant 0 : index
    %35 = vector.load %arg2[%c0_31, %c0_32, %c0_33, %c0_34] : memref<2x16x16x4xf32, #tpu.memory_space<vmem>>, vector<2x1x16x4xf32>
    tpu.vector_store %arg2[%c0_31, %c0_32, %c0_33, %c0_34], %18 {strides = array<i32>} : memref<2x16x16x4xf32, #tpu.memory_space<vmem>>, vector<2x1x16x4xf32>,
    %c0_35 = arith.constant 0 : index
    %c1_36 = arith.constant 1 : index
    %c0_37 = arith.constant 0 : index
    %c0_38 = arith.constant 0 : index
    %36 = vector.load %arg2[%c0_35, %c1_36, %c0_37, %c0_38] : memref<2x16x16x4xf32, #tpu.memory_space<vmem>>, vector<2x14x16x4xf32>
    tpu.vector_store %arg2[%c0_35, %c1_36, %c0_37, %c0_38], %34 {strides = array<i32>} : memref<2x16x16x4xf32, #tpu.memory_space<vmem>>, vector<2x14x16x4xf32>,
    %c0_39 = arith.constant 0 : index
    %c15 = arith.constant 15 : index
    %c0_40 = arith.constant 0 : index
    %c0_41 = arith.constant 0 : index
    %37 = vector.load %arg2[%c0_39, %c15, %c0_40, %c0_41] : memref<2x16x16x4xf32, #tpu.memory_space<vmem>>, vector<2x1x16x4xf32>
    tpu.vector_store %arg2[%c0_39, %c15, %c0_40, %c0_41], %25 {strides = array<i32>} : memref<2x16x16x4xf32, #tpu.memory_space<vmem>>, vector<2x1x16x4xf32>,
    return
  }
  func.func @transform_0(%arg0: i32) -> (i32, i32, i32, i32) {
    %c0_i32 = arith.constant 0 : i32
    %c0_i32_0 = arith.constant 0 : i32
    %c0_i32_1 = arith.constant 0 : i32
    %c0_i32_2 = arith.constant 0 : i32
    return %arg0, %c0_i32, %c0_i32_0, %c0_i32_1 : i32, i32, i32, i32
  }
  func.func @transform_1(%arg0: i32) -> (i32, i32, i32, i32) {
    %c0_i32 = arith.constant 0 : i32
    %c0_i32_0 = arith.constant 0 : i32
    %c0_i32_1 = arith.constant 0 : i32
    %c0_i32_2 = arith.constant 0 : i32
    return %arg0, %c0_i32, %c0_i32_0, %c0_i32_1 : i32, i32, i32, i32
  }
}

</mosaic_0001>

<bundles_post_ra>
// kernel: tpu_custom_call.1
= control target key start
LH: loop header
LB: loop body
LE: loop exit
PB: predicated region body
PF: predicated region fallthrough
CT: control target
= control target key end

     0   :  { %vm8_vm0 = vcmask 24576   ;;  %v965_v0 = vmov 0.0   ;;  %vm137_vm1 = vcmask 31744   ;;  %s1783_s0 = inlined_call_operand.vmem [shape: f32[2,16,16,4], index: 0, kind: input, shape index: {}]   ;;  %s1784_s1 = inlined_call_operand.vmem [shape: f32[2,16,16,4], index: 1, kind: output, shape index: {}]  }
   0x1   :  { %10 = vst.msk [vmem:[#allocation2 + $0x18] sm:$0x1] %vm8_vm0, %v965_v0  ;;  %v73_v1 = vld [vmem:[%s1783_s0] sm:$0xff]  ;;  %v74_v2 = vld [vmem:[%s1783_s0 + $0x8] sm:$0xff]  ;;  %v75_v3 = vld [vmem:[%s1783_s0 + $0x10] sm:$0xff] }
   0x2   :  { %9 = vst.msk [vmem:[#allocation2] sm:$0x1] %vm8_vm0, %v965_v0  ;;  %v76_v4 = vld [vmem:[%s1783_s0 + $0x18] sm:$0xff]  ;;  %v77_v5 = vld [vmem:[%s1783_s0 + $0x20] sm:$0xff]  ;;  %v78_v6 = vld [vmem:[%s1783_s0 + $0x28] sm:$0xff] }
   0x3   :  { %11 = vst.msk [vmem:[#allocation2 + $0x30] sm:$0x1] %vm8_vm0, %v965_v0  ;;  %v79_v7 = vld [vmem:[%s1783_s0 + $0x30] sm:$0xff]  ;;  %v80_v8 = vld [vmem:[%s1783_s0 + $0x38] sm:$0xff]  ;;  %v81_v9 = vld [vmem:[%s1783_s0 + $0x40] sm:$0xff] }
   0x4   :  { %12 = vst.msk [vmem:[#allocation2 + $0x48] sm:$0x1] %vm8_vm0, %v965_v0  ;;  %v82_v10 = vld [vmem:[%s1783_s0 + $0x48] sm:$0xff]  ;;  %v83_v11 = vld [vmem:[%s1783_s0 + $0x50] sm:$0xff]  ;;  %v84_v12 = vld [vmem:[%s1783_s0 + $0x58] sm:$0xff] }
   0x5   :  { %13 = vst.msk [vmem:[#allocation2 + $0x60] sm:$0x1] %vm8_vm0, %v965_v0  ;;  %v85_v13 = vld [vmem:[%s1783_s0 + $0x60] sm:$0xff]  ;;  %v86_v14 = vld [vmem:[%s1783_s0 + $0x68] sm:$0xff]  ;;  %v87_v15 = vld [vmem:[%s1783_s0 + $0x70] sm:$0xff] }
   0x6   :  { %14 = vst.msk [vmem:[#allocation2 + $0x78] sm:$0x1] %vm8_vm0, %v965_v0  ;;  %v88_v16 = vld [vmem:[%s1783_s0 + $0x78] sm:$0xff]  ;;  %v89_v17 = vld [vmem:[%s1783_s0 + $0x80] sm:$0xff]  ;;  %v90_v18 = vld [vmem:[%s1783_s0 + $0x88] sm:$0xff] }
   0x7   :  { %15 = vst.msk [vmem:[#allocation2 + $0x90] sm:$0x1] %vm8_vm0, %v965_v0  ;;  %v91_v19 = vld [vmem:[%s1783_s0 + $0x90] sm:$0xff]  ;;  %v92_v20 = vld [vmem:[%s1783_s0 + $0x98] sm:$0xff]  ;;  %v93_v21 = vld [vmem:[%s1783_s0 + $0xa0] sm:$0xff] }
   0x8   :  { %16 = vst.msk [vmem:[#allocation2 + $0xa8] sm:$0x1] %vm8_vm0, %v965_v0  ;;  %v94_v22 = vld [vmem:[%s1783_s0 + $0xa8] sm:$0xff]  ;;  %v95_v23 = vld [vmem:[%s1783_s0 + $0xb0] sm:$0xff]  ;;  %v96_v24 = vld [vmem:[%s1783_s0 + $0xb8] sm:$0xff] }
   0x9   :  { %17 = vst.msk [vmem:[#allocation2 + $0xc0] sm:$0x1] %vm8_vm0, %v965_v0  ;;  %v97_v25 = vld [vmem:[%s1783_s0 + $0xc0] sm:$0xff]  ;;  %v98_v26 = vld [vmem:[%s1783_s0 + $0xc8] sm:$0xff]  ;;  %v99_v27 = vld [vmem:[%s1783_s0 + $0xd0] sm:$0xff] }
   0xa   :  { %18 = vst.msk [vmem:[#allocation2 + $0xd8] sm:$0x1] %vm8_vm0, %v965_v0  ;;  %v100_v28 = vld [vmem:[%s1783_s0 + $0xd8] sm:$0xff]  ;;  %v101_v29 = vld [vmem:[%s1783_s0 + $0xe0] sm:$0xff]  ;;  %v102_v30 = vld [vmem:[%s1783_s0 + $0xe8] sm:$0xff] }
   0xb   :  { %19 = vst.msk [vmem:[#allocation2 + $0xf0] sm:$0x1] %vm8_vm0, %v965_v0  ;;  %v103_v31 = vld [vmem:[%s1783_s0 + $0xf0] sm:$0xff]  ;;  %v104_v32 = vld [vmem:[%s1783_s0 + $0xf8] sm:$0xff]  ;;  %v105_v33 = vld [vmem:[%s1783_s0 + $0x100] sm:$0xff] }
   0xc   :  { %20 = vst.msk [vmem:[#allocation2 + $0x108] sm:$0x1] %vm8_vm0, %v965_v0  ;;  %v106_v34 = vld [vmem:[%s1783_s0 + $0x108] sm:$0xff]  ;;  %v107_v35 = vld [vmem:[%s1783_s0 + $0x110] sm:$0xff]  ;;  %v108_v36 = vld [vmem:[%s1783_s0 + $0x118] sm:$0xff] }
   0xd   :  { %21 = vst.msk [vmem:[#allocation2 + $0x120] sm:$0x1] %vm8_vm0, %v965_v0  ;;  %v109_v39 = vld [vmem:[%s1783_s0 + $0x120] sm:$0xff]  ;;  %v110_v40 = vld [vmem:[%s1783_s0 + $0x128] sm:$0xff]  ;;  %v111_v43 = vld [vmem:[%s1783_s0 + $0x130] sm:$0xff] }
   0xe   :  { %22 = vst.msk [vmem:[#allocation2 + $0x138] sm:$0x1] %vm8_vm0, %v965_v0  ;;  %v112_v47 = vld [vmem:[%s1783_s0 + $0x138] sm:$0xff]  ;;  %v113_v53 = vld [vmem:[%s1783_s0 + $0x140] sm:$0xff]  ;;  %v114_v59 = vld [vmem:[%s1783_s0 + $0x148] sm:$0xff] }
   0xf   :  { %23 = vst.msk [vmem:[#allocation2 + $0x150] sm:$0x1] %vm8_vm0, %v965_v0 }
  0x10   :  { %24 = vst.msk [vmem:[#allocation2 + $0x168] sm:$0x1] %vm8_vm0, %v965_v0 }
  0x11   :  { %25 = vst.msk [vmem:[#allocation2 + $0x180] sm:$0x1] %vm8_vm0, %v965_v0 }
  0x12   :  { %26 = vst.msk [vmem:[#allocation2 + $0x198] sm:$0x1] %vm8_vm0, %v965_v0 }
  0x13   :  { %27 = vst.msk [vmem:[#allocation2 + $0x1b0] sm:$0x1] %vm8_vm0, %v965_v0 }
  0x14   :  { %28 = vst.msk [vmem:[#allocation2 + $0x1c8] sm:$0x1] %vm8_vm0, %v965_v0 }
  0x15   :  { %29 = vst.msk [vmem:[#allocation2 + $0x1e0] sm:$0x1] %vm8_vm0, %v965_v0 }
  0x16   :  { %30 = vst.msk [vmem:[#allocation2 + $0x1f8] sm:$0x1] %vm8_vm0, %v965_v0 }
  0x17   :  { %31 = vst.msk [vmem:[#allocation2 + $0x210] sm:$0x1] %vm8_vm0, %v965_v0 }
  0x18   :  { %32 = vst.msk [vmem:[#allocation2 + $0x228] sm:$0x1] %vm8_vm0, %v965_v0 }
  0x19   :  { %33 = vst.msk [vmem:[#allocation2 + $0x240] sm:$0x1] %vm8_vm0, %v965_v0 }
  0x1a   :  { %34 = vst.msk [vmem:[#allocation2 + $0x258] sm:$0x1] %vm8_vm0, %v965_v0 }
  0x1b   :  { %35 = vst.msk [vmem:[#allocation2 + $0x270] sm:$0x1] %vm8_vm0, %v965_v0 }
  0x1c   :  { %36 = vst.msk [vmem:[#allocation2 + $0x288] sm:$0x1] %vm8_vm0, %v965_v0 }
  0x1d   :  { %37 = vst.msk [vmem:[#allocation2 + $0x2a0] sm:$0x1] %vm8_vm0, %v965_v0 }
  0x1e   :  { %38 = vst.msk [vmem:[#allocation2 + $0x2b8] sm:$0x1] %vm8_vm0, %v965_v0 }
  0x1f   :  { %39 = vst.msk [vmem:[#allocation2 + $0x2d0] sm:$0x1] %vm8_vm0, %v965_v0 }
  0x20   :  { %40 = vst.msk [vmem:[#allocation2 + $0x2e8] sm:$0x1] %vm8_vm0, %v965_v0 }
  0x21   :  { %41 = vst.msk [vmem:[#allocation2 + $0x11] sm:$0x1] %vm8_vm0, %v965_v0 }
  0x22   :  { %42 = vst.msk [vmem:[#allocation2 + $0x29] sm:$0x1] %vm8_vm0, %v965_v0 }
  0x23   :  { %43 = vst.msk [vmem:[#allocation2 + $0x41] sm:$0x1] %vm8_vm0, %v965_v0 }
  0x24   :  { %44 = vst.msk [vmem:[#allocation2 + $0x59] sm:$0x1] %vm8_vm0, %v965_v0 }
  0x25   :  { %45 = vst.msk [vmem:[#allocation2 + $0x71] sm:$0x1] %vm8_vm0, %v965_v0 }
  0x26   :  { %46 = vst.msk [vmem:[#allocation2 + $0x89] sm:$0x1] %vm8_vm0, %v965_v0 }
  0x27   :  { %47 = vst.msk [vmem:[#allocation2 + $0xa1] sm:$0x1] %vm8_vm0, %v965_v0 }
  0x28   :  { %48 = vst.msk [vmem:[#allocation2 + $0xb9] sm:$0x1] %vm8_vm0, %v965_v0 }
  0x29   :  { %49 = vst.msk [vmem:[#allocation2 + $0xd1] sm:$0x1] %vm8_vm0, %v965_v0 }
  0x2a   :  { %50 = vst.msk [vmem:[#allocation2 + $0xe9] sm:$0x1] %vm8_vm0, %v965_v0 }
  0x2b   :  { %51 = vst.msk [vmem:[#allocation2 + $0x101] sm:$0x1] %vm8_vm0, %v965_v0 }
  0x2c   :  { %52 = vst.msk [vmem:[#allocation2 + $0x119] sm:$0x1] %vm8_vm0, %v965_v0 }
  0x2d   :  { %53 = vst.msk [vmem:[#allocation2 + $0x131] sm:$0x1] %vm8_vm0, %v965_v0 }
  0x2e   :  { %54 = vst.msk [vmem:[#allocation2 + $0x149] sm:$0x1] %vm8_vm0, %v965_v0 }
  0x2f   :  { %55 = vst.msk [vmem:[#allocation2 + $0x161] sm:$0x1] %vm8_vm0, %v965_v0 }
  0x30   :  { %56 = vst.msk [vmem:[#allocation2 + $0x179] sm:$0x1] %vm8_vm0, %v965_v0 }
  0x31   :  { %57 = vst.msk [vmem:[#allocation2 + $0x191] sm:$0x1] %vm8_vm0, %v965_v0 }
  0x32   :  { %58 = vst.msk [vmem:[#allocation2 + $0x1a9] sm:$0x1] %vm8_vm0, %v965_v0 }
  0x33   :  { %59 = vst.msk [vmem:[#allocation2 + $0x1c1] sm:$0x1] %vm8_vm0, %v965_v0 }
  0x34   :  { %60 = vst.msk [vmem:[#allocation2 + $0x1d9] sm:$0x1] %vm8_vm0, %v965_v0 }
  0x35   :  { %61 = vst.msk [vmem:[#allocation2 + $0x1f1] sm:$0x1] %vm8_vm0, %v965_v0 }
  0x36   :  { %62 = vst.msk [vmem:[#allocation2 + $0x209] sm:$0x1] %vm8_vm0, %v965_v0 }
  0x37   :  { %63 = vst.msk [vmem:[#allocation2 + $0x221] sm:$0x1] %vm8_vm0, %v965_v0 }
  0x38   :  { %64 = vst.msk [vmem:[#allocation2 + $0x239] sm:$0x1] %vm8_vm0, %v965_v0 }
  0x39   :  { %65 = vst.msk [vmem:[#allocation2 + $0x251] sm:$0x1] %vm8_vm0, %v965_v0 }
  0x3a   :  { %66 = vst.msk [vmem:[#allocation2 + $0x269] sm:$0x1] %vm8_vm0, %v965_v0 }
  0x3b   :  { %67 = vst.msk [vmem:[#allocation2 + $0x281] sm:$0x1] %vm8_vm0, %v965_v0 }
  0x3c   :  { %68 = vst.msk [vmem:[#allocation2 + $0x299] sm:$0x1] %vm8_vm0, %v965_v0 }
  0x3d   :  { %69 = vst.msk [vmem:[#allocation2 + $0x2b1] sm:$0x1] %vm8_vm0, %v965_v0 }
  0x3e   :  { %70 = vst.msk [vmem:[#allocation2 + $0x2c9] sm:$0x1] %vm8_vm0, %v965_v0 }
  0x3f   :  { %71 = vst.msk [vmem:[#allocation2 + $0x2e1] sm:$0x1] %vm8_vm0, %v965_v0 }
  0x40   :  { %72 = vst.msk [vmem:[#allocation2 + $0x2f9] sm:$0x1] %vm8_vm0, %v965_v0 }
  0x41   :  { %138 = vst.msk [vmem:[#allocation2 + $0x1] sm:$0xff] %vm137_vm1, %v73_v1 }
  0x42   :  { %139 = vst.msk [vmem:[#allocation2 + $0x9] sm:$0xff] %vm137_vm1, %v74_v2  ;;  %v115_v2 = vld [vmem:[%s1783_s0 + $0x150] sm:$0xff] }
  0x43   :  { %140 = vst.msk [vmem:[#allocation2 + $0x19] sm:$0xff] %vm137_vm1, %v75_v3 }
  0x44   :  { %141 = vst.msk [vmem:[#allocation2 + $0x21] sm:$0xff] %vm137_vm1, %v76_v4 }
  0x45   :  { %142 = vst.msk [vmem:[#allocation2 + $0x31] sm:$0xff] %vm137_vm1, %v77_v5 }
  0x46   :  { %143 = vst.msk [vmem:[#allocation2 + $0x39] sm:$0xff] %vm137_vm1, %v78_v6 }
  0x47   :  { %144 = vst.msk [vmem:[#allocation2 + $0x49] sm:$0xff] %vm137_vm1, %v79_v7 }
  0x48   :  { %145 = vst.msk [vmem:[#allocation2 + $0x51] sm:$0xff] %vm137_vm1, %v80_v8  ;;  %v202_v37 = vld [vmem:[#allocation2] sm:$0xff] }
  0x49   :  { %146 = vst.msk [vmem:[#allocation2 + $0x61] sm:$0xff] %vm137_vm1, %v81_v9  ;;  %v266_v38 = vld [vmem:[#allocation2 + $0x1] sm:$0xff]  ;;  %v267_v46 = vld [vmem:[#allocation2 + $0x9] sm:$0xff]  ;;  %v116_v9 = vld [vmem:[%s1783_s0 + $0x158] sm:$0xff] }
  0x4a   :  { %147 = vst.msk [vmem:[#allocation2 + $0x69] sm:$0xff] %vm137_vm1, %v82_v10  ;;  %v268_v41 = vld [vmem:[#allocation2 + $0x19] sm:$0xff]  ;;  %v330_v42 = vmul.f32 2.0, %v266_v38  ;;  %v203_v45 = vld [vmem:[#allocation2 + $0x8] sm:$0xff]  ;;  %v331_v52 = vmul.f32 2.0, %v267_v46 }
  0x4b   :  { %148 = vst.msk [vmem:[#allocation2 + $0x79] sm:$0xff] %vm137_vm1, %v83_v11  ;;  %v332_v44 = vmul.f32 2.0, %v268_v41  ;;  %v204_v48 = vld [vmem:[#allocation2 + $0x18] sm:$0xff]  ;;  %v458_v50 = vld [vmem:[#allocation2 + $0x2] sm:$0xff]  ;;  %v459_v62 = vld [vmem:[#allocation2 + $0xa] sm:$0xff] }
  0x4c   :  { %149 = vst.msk [vmem:[#allocation2 + $0x81] sm:$0xff] %vm137_vm1, %v84_v12  ;;  %v394_v49 = vadd.f32 %v330_v42, %v202_v37  ;;  %v269_v51 = vld [vmem:[#allocation2 + $0x21] sm:$0xff]  ;;  %v395_v61 = vadd.f32 %v331_v52, %v203_v45  ;;  %v120_v38 = vld [vmem:[%s1783_s0 + $0x178] sm:$0xff] }
  0x4d   :  { %150 = vst.msk [vmem:[#allocation2 + $0x91] sm:$0xff] %vm137_vm1, %v85_v13  ;;  %v396_v54 = vadd.f32 %v332_v44, %v204_v48  ;;  %v460_v55 = vld [vmem:[#allocation2 + $0x1a] sm:$0xff]  ;;  %v333_v57 = vmul.f32 2.0, %v269_v51  ;;  %v461_v63 = vld [vmem:[#allocation2 + $0x22] sm:$0xff]  ;;  %v270_v52 = vld [vmem:[#allocation2 + $0x31] sm:$0xff] }
  0x4e   :  { %151 = vst.msk [vmem:[#allocation2 + $0x99] sm:$0xff] %vm137_vm1, %v86_v14  ;;  %v205_v56 = vld [vmem:[#allocation2 + $0x20] sm:$0xff]  ;;  %v1267_v60 = vadd.f32 %v458_v50, %v394_v49  ;;  %v1280_v11 = vadd.f32 %v459_v62, %v395_v61 }
  0x4f   :  { %152 = vst.msk [vmem:[#allocation2 + $0xa9] sm:$0xff] %vm137_vm1, %v87_v15  ;;  %v1273_v3 = vadd.f32 %v460_v55, %v396_v54  ;;  %v397_v4 = vadd.f32 %v333_v57, %v205_v56 }
  0x50   :  { %153 = vst.msk [vmem:[#allocation2 + $0xb1] sm:$0xff] %vm137_vm1, %v88_v16  ;;  %v586_v10 = vmul.f32 2.0, %v1267_v60 }
  0x51   :  { %154 = vst.msk [vmem:[#allocation2 + $0xc1] sm:$0xff] %vm137_vm1, %v89_v17  ;;  %v117_v17 = vld [vmem:[%s1783_s0 + $0x160] sm:$0xff] }
  0x52   :  { %155 = vst.msk [vmem:[#allocation2 + $0xc9] sm:$0xff] %vm137_vm1, %v90_v18  ;;  %v1286_v18 = vadd.f32 %v461_v63, %v397_v4  ;;  %v271_v4 = vld [vmem:[#allocation2 + $0x39] sm:$0xff] }
  0x53   :  { %156 = vst.msk [vmem:[#allocation2 + $0xd9] sm:$0xff] %vm137_vm1, %v91_v19 }
  0x54   :  { %157 = vst.msk [vmem:[#allocation2 + $0xe1] sm:$0xff] %vm137_vm1, %v92_v20 }
  0x55   :  { %158 = vst.msk [vmem:[#allocation2 + $0xf1] sm:$0xff] %vm137_vm1, %v93_v21 }
  0x56   :  { %159 = vst.msk [vmem:[#allocation2 + $0xf9] sm:$0xff] %vm137_vm1, %v94_v22 }
  0x57   :  { %160 = vst.msk [vmem:[#allocation2 + $0x109] sm:$0xff] %vm137_vm1, %v95_v23 }
  0x58   :  { %161 = vst.msk [vmem:[#allocation2 + $0x111] sm:$0xff] %vm137_vm1, %v96_v24  ;;  %v590_v24 = vadd.f32 %v586_v10, %v1273_v3 }
  0x59   :  { %162 = vst.msk [vmem:[#allocation2 + $0x121] sm:$0xff] %vm137_vm1, %v97_v25  ;;  %v587_v25 = vmul.f32 2.0, %v1280_v11 }
  0x5a   :  { %163 = vst.msk [vmem:[#allocation2 + $0x129] sm:$0xff] %vm137_vm1, %v98_v26 }
  0x5b   :  { %164 = vst.msk [vmem:[#allocation2 + $0x139] sm:$0xff] %vm137_vm1, %v99_v27 }
  0x5c   :  { %165 = vst.msk [vmem:[#allocation2 + $0x141] sm:$0xff] %vm137_vm1, %v100_v28 }
  0x5d   :  { %166 = vst.msk [vmem:[#allocation2 + $0x151] sm:$0xff] %vm137_vm1, %v101_v29 }
  0x5e   :  { %167 = vst.msk [vmem:[#allocation2 + $0x159] sm:$0xff] %vm137_vm1, %v102_v30 }
  0x5f   :  { %168 = vst.msk [vmem:[#allocation2 + $0x169] sm:$0xff] %vm137_vm1, %v103_v31  ;;  %v118_v31 = vld [vmem:[%s1783_s0 + $0x168] sm:$0xff] }
  0x60   :  { %169 = vst.msk [vmem:[#allocation2 + $0x171] sm:$0xff] %vm137_vm1, %v104_v32  ;;  %v119_v32 = vld [vmem:[%s1783_s0 + $0x170] sm:$0xff] }
  0x61   :  { %170 = vst.msk [vmem:[#allocation2 + $0x181] sm:$0xff] %vm137_vm1, %v105_v33 }
  0x62   :  { %171 = vst.msk [vmem:[#allocation2 + $0x189] sm:$0xff] %vm137_vm1, %v106_v34 }
  0x63   :  { %172 = vst.msk [vmem:[#allocation2 + $0x199] sm:$0xff] %vm137_vm1, %v107_v35 }
  0x64   :  { %173 = vst.msk [vmem:[#allocation2 + $0x1a1] sm:$0xff] %vm137_vm1, %v108_v36  ;;  %v294_v58 = vld [vmem:[#allocation2 + $0x151] sm:$0xff] }
  0x65   :  { %174 = vst.msk [vmem:[#allocation2 + $0x1b1] sm:$0xff] %vm137_vm1, %v109_v39  ;;  %v358_v0 = vmul.f32 2.0, %v294_v58  ;;  %v295_v1 = vld [vmem:[#allocation2 + $0x159] sm:$0xff]  ;;  %v230_v5 = vld [vmem:[#allocation2 + $0x150] sm:$0xff]  ;;  %v1306_v39 = vmul.f32 0.0625, %v590_v24 }
  0x66   :  { %175 = vst.msk [vmem:[#allocation2 + $0x1b9] sm:$0xff] %vm137_vm1, %v110_v40  ;;  %v232_v6 = vld [vmem:[#allocation2 + $0x168] sm:$0xff]  ;;  %v359_v8 = vmul.f32 2.0, %v295_v1  ;;  %v231_v14 = vld [vmem:[#allocation2 + $0x158] sm:$0xff]  ;;  %v591_v40 = vadd.f32 %v587_v25, %v1286_v18 }
  0x67   :  { %v296_v7 = vld [vmem:[#allocation2 + $0x169] sm:$0xff]  ;;  %176 = vst.msk [vmem:[#allocation2 + $0x1c9] sm:$0xff] %vm137_vm1, %v111_v43  ;;  %v422_v13 = vadd.f32 %v358_v0, %v230_v5  ;;  %v297_v16 = vld [vmem:[#allocation2 + $0x171] sm:$0xff]  ;;  %v487_v30 = vld [vmem:[#allocation2 + $0x15a] sm:$0xff] }
  0x68   :  { %v360_v12 = vmul.f32 2.0, %v296_v7  ;;  %v233_v15 = vld [vmem:[#allocation2 + $0x170] sm:$0xff]  ;;  %177 = vst.msk [vmem:[#allocation2 + $0x1d1] sm:$0xff] %vm137_vm1, %v112_v47  ;;  %v234_v19 = vld [vmem:[#allocation2 + $0x180] sm:$0xff]  ;;  %v361_v22 = vmul.f32 2.0, %v297_v16  ;;  %v423_v23 = vadd.f32 %v359_v8, %v231_v14  ;;  %v1318_v54 = vmul.f32 0.0625, %v591_v40 }
  0x69   :  { %v298_v20 = vld [vmem:[#allocation2 + $0x181] sm:$0xff]  ;;  %v486_v21 = vld [vmem:[#allocation2 + $0x152] sm:$0xff]  ;;  %178 = vst.msk [vmem:[#allocation2 + $0x1e1] sm:$0xff] %vm137_vm1, %v113_v53  ;;  %v299_v28 = vld [vmem:[#allocation2 + $0x189] sm:$0xff] }
  0x6a   :  { %v362_v26 = vmul.f32 2.0, %v298_v20  ;;  %v235_v27 = vld [vmem:[#allocation2 + $0x188] sm:$0xff]  ;;  %v424_v29 = vadd.f32 %v360_v12, %v232_v6  ;;  %179 = vst.msk [vmem:[#allocation2 + $0x1e9] sm:$0xff] %vm137_vm1, %v114_v59  ;;  %v300_v33 = vld [vmem:[#allocation2 + $0x199] sm:$0xff]  ;;  %v363_v34 = vmul.f32 2.0, %v299_v28  ;;  %v1298_v35 = vadd.f32 %v486_v21, %v422_v13  ;;  %v123_v6 = vld [vmem:[%s1783_s0 + $0x190] sm:$0xff] }
  0x6b   :  { %v425_v36 = vadd.f32 %v361_v22, %v233_v15  ;;  %v1300_v37 = vadd.f32 %v487_v30, %v423_v23  ;;  %180 = vst.msk [vmem:[#allocation2 + $0x1f9] sm:$0xff] %vm137_vm1, %v115_v2  ;;  %v364_v41 = vmul.f32 2.0, %v300_v33  ;;  %v301_v43 = vld [vmem:[#allocation2 + $0x1a1] sm:$0xff]  ;;  %v488_v44 = vld [vmem:[#allocation2 + $0x16a] sm:$0xff]  ;;  %v489_v45 = vld [vmem:[#allocation2 + $0x172] sm:$0xff]  ;;  %v334_v59 = vmul.f32 2.0, %v270_v52 }
  0x6c   :  { %v426_v42 = vadd.f32 %v362_v26, %v234_v19  ;;  %181 = vst.msk [vmem:[#allocation2 + $0x201] sm:$0xff] %vm137_vm1, %v116_v9  ;;  %v236_v46 = vld [vmem:[#allocation2 + $0x198] sm:$0xff]  ;;  %v490_v47 = vld [vmem:[#allocation2 + $0x182] sm:$0xff]  ;;  %v365_v48 = vmul.f32 2.0, %v301_v43  ;;  %v427_v49 = vadd.f32 %v363_v34, %v235_v27  ;;  %v1310_v50 = vadd.f32 %v488_v44, %v424_v29  ;;  %v491_v58 = vld [vmem:[#allocation2 + $0x18a] sm:$0xff] }
  0x6d   :  { %v1312_v51 = vadd.f32 %v489_v45, %v425_v36  ;;  %182 = vst.msk [vmem:[#allocation2 + $0x211] sm:$0xff] %vm137_vm1, %v117_v17  ;;  %v121_v53 = vld [vmem:[%s1783_s0 + $0x180] sm:$0xff]  ;;  %v428_v55 = vadd.f32 %v364_v41, %v236_v46  ;;  %v206_v2 = vld [vmem:[#allocation2 + $0x30] sm:$0xff]  ;;  %v122_v5 = vld [vmem:[%s1783_s0 + $0x188] sm:$0xff]  ;;  %v610_v12 = vmul.f32 2.0, %v1273_v3  ;;  %v335_v26 = vmul.f32 2.0, %v271_v4 }
  0x6e   :  { %v1320_v56 = vadd.f32 %v490_v47, %v426_v42  ;;  %v237_v57 = vld [vmem:[#allocation2 + $0x1a0] sm:$0xff]  ;;  %183 = vst.msk [vmem:[#allocation2 + $0x219] sm:$0xff] %vm137_vm1, %v118_v31  ;;  %v1323_v63 = vadd.f32 %v491_v58, %v427_v49  ;;  %v598_v0 = vmul.f32 2.0, %v1310_v50  ;;  %v398_v10 = vadd.f32 %v334_v59, %v206_v2  ;;  %v124_v13 = vld [vmem:[%s1783_s0 + $0x198] sm:$0xff]  ;;  %v272_v20 = vld [vmem:[#allocation2 + $0x49] sm:$0xff] }
  0x6f   :  { %v492_v61 = vld [vmem:[#allocation2 + $0x19a] sm:$0xff]  ;;  %v429_v62 = vadd.f32 %v365_v48, %v237_v57  ;;  %v599_v1 = vmul.f32 2.0, %v1312_v51  ;;  %184 = vst.msk [vmem:[#allocation2 + $0x229] sm:$0xff] %vm137_vm1, %v119_v32  ;;  %v493_v9 = vld [vmem:[#allocation2 + $0x1a2] sm:$0xff]  ;;  %v462_v19 = vld [vmem:[#allocation2 + $0x32] sm:$0xff]  ;;  %v666_v25 = vadd.f32 %v610_v12, %v1267_v60  ;;  %v611_v33 = vmul.f32 2.0, %v1286_v18 }
  0x70   :  { %v1334_v7 = vadd.f32 %v492_v61, %v428_v55  ;;  %v588_v8 = vmul.f32 2.0, %v1320_v56  ;;  %185 = vst.msk [vmem:[#allocation2 + $0x231] sm:$0xff] %vm137_vm1, %v120_v38  ;;  %v589_v15 = vmul.f32 2.0, %v1323_v63  ;;  %v602_v16 = vadd.f32 %v598_v0, %v1298_v35  ;;  %v125_v21 = vld [vmem:[%s1783_s0 + $0x1a0] sm:$0xff]  ;;  %v126_v22 = vld [vmem:[%s1783_s0 + $0x1a8] sm:$0xff]  ;;  %v273_v27 = vld [vmem:[#allocation2 + $0x51] sm:$0xff] }
  0x71   :  { %v1342_v14 = vadd.f32 %v493_v9, %v429_v62  ;;  %v603_v17 = vadd.f32 %v599_v1, %v1300_v37  ;;  %186 = vst.msk [vmem:[#allocation2 + $0x241] sm:$0xff] %vm137_vm1, %v121_v53  ;;  %v1355_v24 = vadd.f32 %v462_v19, %v398_v10  ;;  %v127_v28 = vld [vmem:[%s1783_s0 + $0x1b0] sm:$0xff]  ;;  %v207_v32 = vld [vmem:[#allocation2 + $0x38] sm:$0xff]  ;;  %v274_v34 = vld [vmem:[#allocation2 + $0x61] sm:$0xff]  ;;  %v336_v41 = vmul.f32 2.0, %v272_v20 }
  0x72   :  { %v592_v23 = vadd.f32 %v588_v8, %v1334_v7  ;;  %187 = vst.msk [vmem:[#allocation2 + $0x249] sm:$0xff] %vm137_vm1, %v122_v5  ;;  %v1363_v30 = vmul.f32 0.0625, %v602_v16  ;;  %v128_v60 = vld [vmem:[%s1783_s0 + $0x1b8] sm:$0xff]  ;;  %v399_v40 = vadd.f32 %v335_v26, %v207_v32  ;;  %v275_v42 = vld [vmem:[#allocation2 + $0x69] sm:$0xff]  ;;  %v667_v46 = vadd.f32 %v611_v33, %v1280_v11  ;;  %v129_v52 = vld [vmem:[%s1783_s0 + $0x1c0] sm:$0xff] }
  0x73   :  { %v593_v29 = vadd.f32 %v589_v15, %v1342_v14  ;;  %v1365_v31 = vmul.f32 0.0625, %v603_v17  ;;  %188 = vst.msk [vmem:[#allocation2 + $0x259] sm:$0xff] %vm137_vm1, %v123_v6  ;;  %v722_v38 = vadd.f32 %v666_v25, %v1355_v24  ;;  %v276_v43 = vld [vmem:[#allocation2 + $0x79] sm:$0xff]  ;;  %v208_v47 = vld [vmem:[#allocation2 + $0x48] sm:$0xff]  ;;  %v612_v48 = vmul.f32 2.0, %v1355_v24  ;;  %v209_v58 = vld [vmem:[#allocation2 + $0x50] sm:$0xff] }
  0x74   :  { %v1372_v36 = vmul.f32 0.0625, %v592_v23  ;;  %189 = vst.msk [vmem:[#allocation2 + $0x261] sm:$0xff] %vm137_vm1, %v124_v13  ;;  %v463_v45 = vld [vmem:[#allocation2 + $0x3a] sm:$0xff]  ;;  %v337_v49 = vmul.f32 2.0, %v273_v27  ;;  %v400_v57 = vadd.f32 %v336_v41, %v208_v47  ;;  %v338_v59 = vmul.f32 2.0, %v274_v34  ;;  %v130_v11 = vld [vmem:[%s1783_s0 + $0x1c8] sm:$0xff] }
  0x75   :  { %v1376_v44 = vmul.f32 0.0625, %v593_v29  ;;  %190 = vst.msk [vmem:[#allocation2 + $0x271] sm:$0xff] %vm137_vm1, %v125_v21  ;;  %v1384_v53 = vmul.f32 0.0625, %v722_v38  ;;  %v527_v55 = vadd.f32 %v463_v45, %v399_v40  ;;  %v277_v61 = vld [vmem:[#allocation2 + $0x81] sm:$0xff]  ;;  %v464_v62 = vld [vmem:[#allocation2 + $0x4a] sm:$0xff]  ;;  %v668_v0 = vadd.f32 %v612_v48, %v1273_v3  ;;  %v465_v9 = vld [vmem:[#allocation2 + $0x52] sm:$0xff] }
  0x76   :  { %191 = vst.msk [vmem:[#allocation2 + $0x279] sm:$0xff] %vm137_vm1, %v126_v22  ;;  %v401_v1 = vadd.f32 %v337_v49, %v209_v58  ;;  %v210_v2 = vld [vmem:[#allocation2 + $0x60] sm:$0xff]  ;;  %v339_v4 = vmul.f32 2.0, %v275_v42  ;;  %v340_v5 = vmul.f32 2.0, %v276_v43  ;;  %v528_v8 = vadd.f32 %v464_v62, %v400_v57  ;;  %v211_v13 = vld [vmem:[#allocation2 + $0x68] sm:$0xff]  ;;  %v212_v15 = vld [vmem:[#allocation2 + $0x78] sm:$0xff] }
  0x77   :  { %192 = vst.msk [vmem:[#allocation2 + $0x289] sm:$0xff] %vm137_vm1, %v127_v28  ;;  %v723_v6 = vadd.f32 %v667_v46, %v527_v55  ;;  %v613_v10 = vmul.f32 2.0, %v527_v55  ;;  %v402_v12 = vadd.f32 %v338_v59, %v210_v2  ;;  %v131_v16 = vld [vmem:[%s1783_s0 + $0x1d0] sm:$0xff]  ;;  %v132_v3 = vld [vmem:[%s1783_s0 + $0x1d8] sm:$0xff]  ;;  %v466_v19 = vld [vmem:[#allocation2 + $0x62] sm:$0xff]  ;;  %v341_v22 = vmul.f32 2.0, %v277_v61 }
  0x78   :  { %193 = vst.msk [vmem:[#allocation2 + $0x291] sm:$0xff] %vm137_vm1, %v128_v60  ;;  %v529_v17 = vadd.f32 %v465_v9, %v401_v1  ;;  %v403_v20 = vadd.f32 %v339_v4, %v211_v13  ;;  %v404_v21 = vadd.f32 %v340_v5, %v212_v15  ;;  %v724_v25 = vadd.f32 %v668_v0, %v528_v8  ;;  %v467_v28 = vld [vmem:[#allocation2 + $0x6a] sm:$0xff]  ;;  %v468_v29 = vld [vmem:[#allocation2 + $0x7a] sm:$0xff] }
  0x79   :  { %194 = vst.msk [vmem:[#allocation2 + $0x2a1] sm:$0xff] %vm137_vm1, %v129_v52  ;;  %v1400_v23 = vmul.f32 0.0625, %v723_v6  ;;  %v669_v26 = vadd.f32 %v613_v10, %v1286_v18  ;;  %v530_v27 = vadd.f32 %v466_v19, %v402_v12  ;;  %v278_v32 = vld [vmem:[#allocation2 + $0x91] sm:$0xff]  ;;  %v133_v33 = vld [vmem:[%s1783_s0 + $0x1e0] sm:$0xff]  ;;  %v614_v34 = vmul.f32 2.0, %v528_v8  ;;  %v134_v18 = vld [vmem:[%s1783_s0 + $0x1e8] sm:$0xff] }
  0x7a   :  { %195 = vst.msk [vmem:[#allocation2 + $0x2a9] sm:$0xff] %vm137_vm1, %v130_v11  ;;  %v531_v60 = vadd.f32 %v467_v28, %v403_v20  ;;  %v615_v38 = vmul.f32 2.0, %v529_v17  ;;  %v1407_v40 = vadd.f32 %v468_v29, %v404_v21  ;;  %v213_v41 = vld [vmem:[#allocation2 + $0x80] sm:$0xff]  ;;  %v1413_v42 = vmul.f32 0.0625, %v724_v25  ;;  %v135_v47 = vld [vmem:[%s1783_s0 + $0x1f0] sm:$0xff]  ;;  %v136_v61 = vld [vmem:[%s1783_s0 + $0x1f8] sm:$0xff] }
  0x7b   :  { %196 = vst.msk [vmem:[#allocation2 + $0x2b9] sm:$0xff] %vm137_vm1, %v131_v16  ;;  %v725_v43 = vadd.f32 %v669_v26, %v529_v17  ;;  %v616_v45 = vmul.f32 2.0, %v530_v27  ;;  %v405_v46 = vadd.f32 %v341_v22, %v213_v41  ;;  %v670_v48 = vadd.f32 %v614_v34, %v1355_v24  ;;  %v469_v52 = vld [vmem:[#allocation2 + $0x82] sm:$0xff]  ;;  %v279_v59 = vld [vmem:[#allocation2 + $0x99] sm:$0xff]  ;;  %v214_v1 = vld [vmem:[#allocation2 + $0x90] sm:$0xff] }
  0x7c   :  { %197 = vst.msk [vmem:[#allocation2 + $0x2c1] sm:$0xff] %vm137_vm1, %v132_v3  ;;  %v671_v49 = vadd.f32 %v615_v38, %v527_v55  ;;  %v617_v57 = vmul.f32 2.0, %v531_v60  ;;  %v342_v58 = vmul.f32 2.0, %v278_v32  ;;  %v618_v2 = vmul.f32 2.0, %v1407_v40  ;;  %v280_v6 = vld [vmem:[#allocation2 + $0xa9] sm:$0xff]  ;;  %v470_v10 = vld [vmem:[#allocation2 + $0x92] sm:$0xff] }
  0x7d   :  { %198 = vst.msk [vmem:[#allocation2 + $0x2d1] sm:$0xff] %vm137_vm1, %v133_v33  ;;  %v1424_v11 = vmul.f32 0.0625, %v725_v43  ;;  %v672_v62 = vadd.f32 %v616_v45, %v528_v8  ;;  %v1426_v0 = vadd.f32 %v469_v52, %v405_v46  ;;  %v726_v24 = vadd.f32 %v670_v48, %v530_v27  ;;  %v281_v15 = vld [vmem:[#allocation2 + $0xb1] sm:$0xff]  ;;  %v282_v21 = vld [vmem:[#allocation2 + $0xc1] sm:$0xff]  ;;  %v283_v22 = vld [vmem:[#allocation2 + $0xc9] sm:$0xff] }
  0x7e   :  { %199 = vst.msk [vmem:[#allocation2 + $0x2d9] sm:$0xff] %vm137_vm1, %v134_v18  ;;  %v727_v55 = vadd.f32 %v671_v49, %v531_v60  ;;  %v673_v4 = vadd.f32 %v617_v57, %v529_v17  ;;  %v406_v5 = vadd.f32 %v342_v58, %v214_v1  ;;  %v674_v12 = vadd.f32 %v618_v2, %v530_v27  ;;  %v215_v20 = vld [vmem:[#allocation2 + $0x98] sm:$0xff]  ;;  %v216_v38 = vld [vmem:[#allocation2 + $0xa8] sm:$0xff]  ;;  %v218_v57 = vld [vmem:[#allocation2 + $0xc0] sm:$0xff] }
  0x7f   :  { %200 = vst.msk [vmem:[#allocation2 + $0x2e9] sm:$0xff] %vm137_vm1, %v135_v47  ;;  %v728_v9 = vadd.f32 %v672_v62, %v1407_v40  ;;  %v343_v13 = vmul.f32 2.0, %v279_v59  ;;  %v619_v8 = vmul.f32 2.0, %v1426_v0  ;;  %v1434_v16 = vmul.f32 0.0625, %v726_v24  ;;  %v284_v29 = vld [vmem:[#allocation2 + $0xd9] sm:$0xff]  ;;  %v472_v43 = vld [vmem:[#allocation2 + $0xaa] sm:$0xff] }
  0x80   :  { %201 = vst.msk [vmem:[#allocation2 + $0x2f1] sm:$0xff] %vm137_vm1, %v136_v61  ;;  %v1436_v3 = vmul.f32 0.0625, %v727_v55  ;;  %v729_v17 = vadd.f32 %v673_v4, %v1426_v0  ;;  %v1439_v19 = vadd.f32 %v470_v10, %v406_v5  ;;  %v344_v28 = vmul.f32 2.0, %v280_v6  ;;  %v471_v34 = vld [vmem:[#allocation2 + $0x9a] sm:$0xff]  ;;  %v474_v2 = vld [vmem:[#allocation2 + $0xc2] sm:$0xff] }
  0x81   :  { %834 = vst.msk [vmem:[%s1784_s1] sm:$0xff] %vm137_vm1, %v1306_v39  ;;  %v1446_v25 = vmul.f32 0.0625, %v728_v9  ;;  %v407_v26 = vadd.f32 %v343_v13, %v215_v20  ;;  %v675_v27 = vadd.f32 %v619_v8, %v531_v60  ;;  %v345_v41 = vmul.f32 2.0, %v281_v15  ;;  %v219_v24 = vld [vmem:[#allocation2 + $0xc8] sm:$0xff] }
  0x82   :  { %835 = vst.msk [vmem:[%s1784_s1 + $0x8] sm:$0xff] %vm137_vm1, %v1318_v54  ;;  %v1453_v32 = vmul.f32 0.0625, %v729_v17  ;;  %v730_v33 = vadd.f32 %v674_v12, %v1439_v19  ;;  %v620_v39 = vmul.f32 2.0, %v1439_v19  ;;  %v408_v18 = vadd.f32 %v344_v28, %v216_v38  ;;  %v217_v54 = vld [vmem:[#allocation2 + $0xb0] sm:$0xff] }
  0x83   :  { %836 = vst.msk [vmem:[%s1784_s1 + $0x100] sm:$0xff] %vm137_vm1, %v1372_v36  ;;  %v1462_v60 = vadd.f32 %v471_v34, %v407_v26  ;;  %v346_v45 = vmul.f32 2.0, %v282_v21  ;;  %v347_v46 = vmul.f32 2.0, %v283_v22  ;;  %v409_v52 = vadd.f32 %v345_v41, %v217_v54  ;;  %v473_v36 = vld [vmem:[#allocation2 + $0xb2] sm:$0xff]  ;;  %v475_v38 = vld [vmem:[#allocation2 + $0xca] sm:$0xff] }
  0x84   :  { %837 = vst.msk [vmem:[%s1784_s1 + $0x108] sm:$0xff] %vm137_vm1, %v1376_v44  ;;  %v326_v47 = vld [vmem:[#allocation2 + $0x2d1] sm:$0xff]  ;;  %v1469_v48 = vmul.f32 0.0625, %v730_v33  ;;  %v676_v49 = vadd.f32 %v620_v39, %v1407_v40  ;;  %v348_v58 = vmul.f32 2.0, %v284_v29  ;;  %v536_v44 = vadd.f32 %v472_v43, %v408_v18  ;;  %v285_v39 = vld [vmem:[#allocation2 + $0xe1] sm:$0xff] }
  0x85   :  { %960 = vst.msk [vmem:[%s1784_s1 + $0xf0] sm:$0xff] %vm137_vm1, %v1363_v30  ;;  %v390_v59 = vmul.f32 2.0, %v326_v47  ;;  %v327_v61 = vld [vmem:[#allocation2 + $0x2d9] sm:$0xff]  ;;  %v731_v62 = vadd.f32 %v675_v27, %v1462_v60  ;;  %v621_v1 = vmul.f32 2.0, %v1462_v60  ;;  %v262_v40 = vld [vmem:[#allocation2 + $0x2d0] sm:$0xff]  ;;  %v1484_v30 = vadd.f32 %v473_v36, %v409_v52 }
  0x86   :  { %961 = vst.msk [vmem:[%s1784_s1 + $0xf8] sm:$0xff] %vm137_vm1, %v1365_v31  ;;  %v264_v55 = vld [vmem:[#allocation2 + $0x2e8] sm:$0xff]  ;;  %v391_v5 = vmul.f32 2.0, %v327_v61  ;;  %v410_v6 = vadd.f32 %v346_v45, %v218_v57  ;;  %v411_v9 = vadd.f32 %v347_v46, %v219_v24  ;;  %v263_v13 = vld [vmem:[#allocation2 + $0x2d8] sm:$0xff]  ;;  %v732_v17 = vadd.f32 %v676_v49, %v536_v44 }
  0x87   :  { %v328_v4 = vld [vmem:[#allocation2 + $0x2e9] sm:$0xff]  ;;  %v454_v12 = vadd.f32 %v390_v59, %v262_v40  ;;  %v329_v15 = vld [vmem:[#allocation2 + $0x2f1] sm:$0xff]  ;;  %904 = vst.msk [vmem:[%s1784_s1 + $0x10] sm:$0xff] %vm137_vm1, %v1384_v53  ;;  %v787_v31 = vmul.f32 0.0625, %v731_v62  ;;  %v677_v26 = vadd.f32 %v621_v1, %v1426_v0  ;;  %v519_v33 = vld [vmem:[#allocation2 + $0x2da] sm:$0xff]  ;;  %v622_v34 = vmul.f32 2.0, %v536_v44 }
  0x88   :  { %v392_v10 = vmul.f32 2.0, %v328_v4  ;;  %v265_v8 = vld [vmem:[#allocation2 + $0x2f0] sm:$0xff]  ;;  %v393_v21 = vmul.f32 2.0, %v329_v15  ;;  %v455_v22 = vadd.f32 %v391_v5, %v263_v13  ;;  %905 = vst.msk [vmem:[%s1784_s1 + $0x18] sm:$0xff] %vm137_vm1, %v1400_v23  ;;  %v1497_v27 = vadd.f32 %v474_v2, %v410_v6  ;;  %v220_v54 = vld [vmem:[#allocation2 + $0xd8] sm:$0xff]  ;;  %v477_v4 = vld [vmem:[#allocation2 + $0xe2] sm:$0xff] }
  0x89   :  { %v518_v20 = vld [vmem:[#allocation2 + $0x2d2] sm:$0xff]  ;;  %906 = vst.msk [vmem:[%s1784_s1 + $0x20] sm:$0xff] %vm137_vm1, %v1413_v42  ;;  %v788_v53 = vmul.f32 0.0625, %v732_v17  ;;  %v520_v41 = vld [vmem:[#allocation2 + $0x2ea] sm:$0xff]  ;;  %v733_v0 = vadd.f32 %v677_v26, %v1484_v30  ;;  %v1514_v43 = vadd.f32 %v475_v38, %v411_v9  ;;  %v678_v46 = vadd.f32 %v622_v34, %v1439_v19  ;;  %v476_v36 = vld [vmem:[#allocation2 + $0xda] sm:$0xff] }
  0x8a   :  { %v456_v28 = vadd.f32 %v392_v10, %v264_v55  ;;  %v1499_v29 = vadd.f32 %v518_v20, %v454_v12  ;;  %v457_v23 = vadd.f32 %v393_v21, %v265_v8  ;;  %v1506_v18 = vadd.f32 %v519_v33, %v455_v22  ;;  %907 = vst.msk [vmem:[%s1784_s1 + $0x28] sm:$0xff] %vm137_vm1, %v1424_v11  ;;  %v521_v45 = vld [vmem:[#allocation2 + $0x2f2] sm:$0xff]  ;;  %v288_v12 = vld [vmem:[#allocation2 + $0x109] sm:$0xff] }
  0x8b   :  { %908 = vst.msk [vmem:[%s1784_s1 + $0x30] sm:$0xff] %vm137_vm1, %v1434_v16  ;;  %v623_v47 = vmul.f32 2.0, %v1484_v30  ;;  %v412_v49 = vadd.f32 %v348_v58, %v220_v54  ;;  %v789_v52 = vmul.f32 0.0625, %v733_v0  ;;  %v624_v57 = vmul.f32 2.0, %v1497_v27  ;;  %v286_v61 = vld [vmem:[#allocation2 + $0xf1] sm:$0xff]  ;;  %v287_v6 = vld [vmem:[#allocation2 + $0xf9] sm:$0xff] }
  0x8c   :  { %v1516_v42 = vadd.f32 %v520_v41, %v456_v28  ;;  %v1525_v11 = vadd.f32 %v521_v45, %v457_v23  ;;  %909 = vst.msk [vmem:[%s1784_s1 + $0x38] sm:$0xff] %vm137_vm1, %v1436_v3  ;;  %v349_v59 = vmul.f32 2.0, %v285_v39  ;;  %v734_v19 = vadd.f32 %v678_v46, %v1497_v27  ;;  %v221_v3 = vld [vmem:[#allocation2 + $0xe0] sm:$0xff]  ;;  %v289_v20 = vld [vmem:[#allocation2 + $0x111] sm:$0xff]  ;;  %v291_v41 = vld [vmem:[#allocation2 + $0x129] sm:$0xff] }
  0x8d   :  { %910 = vst.msk [vmem:[%s1784_s1 + $0x40] sm:$0xff] %vm137_vm1, %v1446_v25  ;;  %v679_v58 = vadd.f32 %v623_v47, %v1462_v60  ;;  %v1541_v62 = vadd.f32 %v476_v36, %v412_v49  ;;  %v680_v2 = vadd.f32 %v624_v57, %v536_v44  ;;  %v625_v40 = vmul.f32 2.0, %v1514_v43  ;;  %v478_v26 = vld [vmem:[#allocation2 + $0xf2] sm:$0xff]  ;;  %v224_v54 = vld [vmem:[#allocation2 + $0x108] sm:$0xff]  ;;  %v479_v49 = vld [vmem:[#allocation2 + $0xfa] sm:$0xff] }
  0x8e   :  { %v600_v16 = vmul.f32 2.0, %v1516_v42  ;;  %v601_v1 = vmul.f32 2.0, %v1525_v11  ;;  %911 = vst.msk [vmem:[%s1784_s1 + $0x48] sm:$0xff] %vm137_vm1, %v1453_v32  ;;  %v413_v24 = vadd.f32 %v349_v59, %v221_v3  ;;  %v790_v60 = vmul.f32 0.0625, %v734_v19  ;;  %v223_v34 = vld [vmem:[#allocation2 + $0xf8] sm:$0xff]  ;;  %v225_v59 = vld [vmem:[#allocation2 + $0x110] sm:$0xff] }
  0x8f   :  { %912 = vst.msk [vmem:[%s1784_s1 + $0x50] sm:$0xff] %vm137_vm1, %v1469_v48  ;;  %v735_v55 = vadd.f32 %v679_v58, %v1514_v43  ;;  %v350_v5 = vmul.f32 2.0, %v286_v61  ;;  %v736_v44 = vadd.f32 %v680_v2, %v1541_v62  ;;  %v681_v10 = vadd.f32 %v625_v40, %v1484_v30  ;;  %v222_v48 = vld [vmem:[#allocation2 + $0xf0] sm:$0xff]  ;;  %v292_v47 = vld [vmem:[#allocation2 + $0x139] sm:$0xff] }
  0x90   :  { %v604_v25 = vadd.f32 %v600_v16, %v1499_v29  ;;  %v605_v32 = vadd.f32 %v601_v1, %v1506_v18  ;;  %913 = vst.msk [vmem:[%s1784_s1 + $0x58] sm:$0xff] %vm137_vm1, %v787_v31  ;;  %v1563_v9 = vadd.f32 %v477_v4, %v413_v24  ;;  %v626_v17 = vmul.f32 2.0, %v1541_v62  ;;  %v290_v31 = vld [vmem:[#allocation2 + $0x121] sm:$0xff]  ;;  %v480_v19 = vld [vmem:[#allocation2 + $0x10a] sm:$0xff]  ;;  %v481_v40 = vld [vmem:[#allocation2 + $0x112] sm:$0xff] }
  0x91   :  { %914 = vst.msk [vmem:[%s1784_s1 + $0x60] sm:$0xff] %vm137_vm1, %v788_v53  ;;  %v791_v8 = vmul.f32 0.0625, %v735_v55  ;;  %v414_v15 = vadd.f32 %v350_v5, %v222_v48  ;;  %v792_v30 = vmul.f32 0.0625, %v736_v44  ;;  %v351_v28 = vmul.f32 2.0, %v287_v6  ;;  %v226_v61 = vld [vmem:[#allocation2 + $0x120] sm:$0xff]  ;;  %v228_v44 = vld [vmem:[#allocation2 + $0x138] sm:$0xff] }
  0x92   :  { %v608_v13 = vmul.f32 0.0625, %v604_v25  ;;  %v609_v21 = vmul.f32 0.0625, %v605_v32  ;;  %915 = vst.msk [vmem:[%s1784_s1 + $0x68] sm:$0xff] %vm137_vm1, %v789_v52  ;;  %v737_v22 = vadd.f32 %v681_v10, %v1563_v9  ;;  %v682_v53 = vadd.f32 %v626_v17, %v1497_v27  ;;  %v482_v25 = vld [vmem:[#allocation2 + $0x122] sm:$0xff]  ;;  %v483_v17 = vld [vmem:[#allocation2 + $0x12a] sm:$0xff] }
  0x93   :  { %v542_v33 = vadd.f32 %v478_v26, %v414_v15  ;;  %v627_v38 = vmul.f32 2.0, %v1563_v9  ;;  %v352_v39 = vmul.f32 2.0, %v288_v12  ;;  %v415_v0 = vadd.f32 %v351_v28, %v223_v34  ;;  %916 = vst.msk [vmem:[%s1784_s1 + $0x70] sm:$0xff] %vm137_vm1, %v790_v60  ;;  %v227_v32 = vld [vmem:[#allocation2 + $0x128] sm:$0xff] }
  0x94   :  { %962 = vst.msk [vmem:[%s1784_s1 + $0x1f0] sm:$0xff] %vm137_vm1, %v608_v13  ;;  %v793_v23 = vmul.f32 0.0625, %v737_v22  ;;  %v353_v45 = vmul.f32 2.0, %v289_v20  ;;  %v354_v46 = vmul.f32 2.0, %v290_v31  ;;  %v355_v1 = vmul.f32 2.0, %v291_v41  ;;  %v293_v13 = vld [vmem:[#allocation2 + $0x141] sm:$0xff] }
  0x95   :  { %963 = vst.msk [vmem:[%s1784_s1 + $0x1f8] sm:$0xff] %vm137_vm1, %v609_v21  ;;  %v738_v27 = vadd.f32 %v682_v53, %v542_v33  ;;  %v683_v52 = vadd.f32 %v627_v38, %v1514_v43  ;;  %v416_v36 = vadd.f32 %v352_v39, %v224_v54  ;;  %v628_v57 = vmul.f32 2.0, %v542_v33  ;;  %v484_v31 = vld [vmem:[#allocation2 + $0x13a] sm:$0xff] }
  0x96   :  { %917 = vst.msk [vmem:[%s1784_s1 + $0x78] sm:$0xff] %vm137_vm1, %v791_v8  ;;  %v543_v16 = vadd.f32 %v479_v49, %v415_v0  ;;  %v417_v58 = vadd.f32 %v353_v45, %v225_v59  ;;  %v418_v3 = vadd.f32 %v354_v46, %v226_v61  ;;  %v356_v60 = vmul.f32 2.0, %v292_v47  ;;  %v229_v41 = vld [vmem:[#allocation2 + $0x140] sm:$0xff] }
  0x97   :  { %918 = vst.msk [vmem:[%s1784_s1 + $0x80] sm:$0xff] %vm137_vm1, %v792_v30  ;;  %v794_v43 = vmul.f32 0.0625, %v738_v27  ;;  %v544_v2 = vadd.f32 %v480_v19, %v416_v36  ;;  %v684_v24 = vadd.f32 %v628_v57, %v1541_v62  ;;  %v419_v48 = vadd.f32 %v355_v1, %v227_v32  ;;  %v302_v27 = vld [vmem:[#allocation2 + $0x1b1] sm:$0xff]  ;;  %v303_v61 = vld [vmem:[#allocation2 + $0x1b9] sm:$0xff] }
  0x98   :  { %919 = vst.msk [vmem:[%s1784_s1 + $0x88] sm:$0xff] %vm137_vm1, %v793_v23  ;;  %v739_v55 = vadd.f32 %v683_v52, %v543_v16  ;;  %v545_v4 = vadd.f32 %v481_v40, %v417_v58  ;;  %v629_v5 = vmul.f32 2.0, %v543_v16  ;;  %v546_v6 = vadd.f32 %v482_v25, %v418_v3  ;;  %v485_v52 = vld [vmem:[#allocation2 + $0x142] sm:$0xff] }
  0x99   :  { %920 = vst.msk [vmem:[%s1784_s1 + $0x90] sm:$0xff] %vm137_vm1, %v794_v43  ;;  %v740_v62 = vadd.f32 %v684_v24, %v544_v2  ;;  %v630_v10 = vmul.f32 2.0, %v544_v2  ;;  %v420_v12 = vadd.f32 %v356_v60, %v228_v44  ;;  %v547_v26 = vadd.f32 %v483_v17, %v419_v48 }
  0x9a   :  { %v795_v8 = vmul.f32 0.0625, %v739_v55  ;;  %v685_v15 = vadd.f32 %v629_v5, %v1563_v9  ;;  %v631_v20 = vmul.f32 2.0, %v545_v4  ;;  %v632_v21 = vmul.f32 2.0, %v546_v6  ;;  %v238_v55 = vld [vmem:[#allocation2 + $0x1b0] sm:$0xff] }
  0x9b   :  { %v796_v30 = vmul.f32 0.0625, %v740_v62  ;;  %v686_v22 = vadd.f32 %v630_v10, %v542_v33  ;;  %v548_v28 = vadd.f32 %v484_v31, %v420_v12  ;;  %v357_v39 = vmul.f32 2.0, %v293_v13  ;;  %v304_v5 = vld [vmem:[#allocation2 + $0x1c9] sm:$0xff]  ;;  %v239_v62 = vld [vmem:[#allocation2 + $0x1b8] sm:$0xff]  ;;  %v306_v10 = vld [vmem:[#allocation2 + $0x1e1] sm:$0xff] }
  0x9c   :  { %921 = vst.msk [vmem:[%s1784_s1 + $0x98] sm:$0xff] %vm137_vm1, %v795_v8  ;;  %v741_v53 = vadd.f32 %v685_v15, %v545_v4  ;;  %v687_v34 = vadd.f32 %v631_v20, %v543_v16  ;;  %v688_v38 = vadd.f32 %v632_v21, %v544_v2  ;;  %v633_v23 = vmul.f32 2.0, %v547_v26  ;;  %v494_v8 = vld [vmem:[#allocation2 + $0x1b2] sm:$0xff]  ;;  %v495_v20 = vld [vmem:[#allocation2 + $0x1ba] sm:$0xff] }
  0x9d   :  { %922 = vst.msk [vmem:[%s1784_s1 + $0xa0] sm:$0xff] %vm137_vm1, %v796_v30  ;;  %v742_v9 = vadd.f32 %v686_v22, %v546_v6  ;;  %v634_v33 = vmul.f32 2.0, %v548_v28  ;;  %v636_v0 = vmul.f32 2.0, %v1298_v35  ;;  %v421_v47 = vadd.f32 %v357_v39, %v229_v41  ;;  %v242_v41 = vld [vmem:[#allocation2 + $0x1e0] sm:$0xff] }
  0x9e   :  { %v797_v54 = vmul.f32 0.0625, %v741_v53  ;;  %v743_v45 = vadd.f32 %v687_v34, %v547_v26  ;;  %v744_v46 = vadd.f32 %v688_v38, %v548_v28  ;;  %v689_v36 = vadd.f32 %v633_v23, %v545_v4  ;;  %v307_v23 = vld [vmem:[#allocation2 + $0x1e9] sm:$0xff] }
  0x9f   :  { %v798_v49 = vmul.f32 0.0625, %v742_v9  ;;  %v690_v57 = vadd.f32 %v634_v33, %v546_v6  ;;  %v692_v59 = vadd.f32 %v636_v0, %v548_v28  ;;  %v549_v58 = vadd.f32 %v485_v52, %v421_v47  ;;  %v305_v6 = vld [vmem:[#allocation2 + $0x1d1] sm:$0xff] }
  0xa0   :  { %923 = vst.msk [vmem:[%s1784_s1 + $0xa8] sm:$0xff] %vm137_vm1, %v797_v54  ;;  %v799_v16 = vmul.f32 0.0625, %v743_v45  ;;  %v800_v19 = vmul.f32 0.0625, %v744_v46  ;;  %v637_v3 = vmul.f32 2.0, %v1300_v37  ;;  %v366_v2 = vmul.f32 2.0, %v302_v27  ;;  %v241_v9 = vld [vmem:[#allocation2 + $0x1d0] sm:$0xff] }
  0xa1   :  { %924 = vst.msk [vmem:[%s1784_s1 + $0xb0] sm:$0xff] %vm137_vm1, %v798_v49  ;;  %v746_v1 = vadd.f32 %v690_v57, %v1298_v35  ;;  %v748_v43 = vadd.f32 %v692_v59, %v1310_v50  ;;  %v638_v24 = vmul.f32 2.0, %v1334_v7  ;;  %v745_v40 = vadd.f32 %v689_v36, %v549_v58  ;;  %v308_v46 = vld [vmem:[#allocation2 + $0x1f9] sm:$0xff]  ;;  %v498_v36 = vld [vmem:[#allocation2 + $0x1e2] sm:$0xff] }
  0xa2   :  { %925 = vst.msk [vmem:[%s1784_s1 + $0xb8] sm:$0xff] %vm137_vm1, %v799_v16  ;;  %v635_v25 = vmul.f32 2.0, %v549_v58  ;;  %v693_v60 = vadd.f32 %v637_v3, %v549_v58  ;;  %v367_v4 = vmul.f32 2.0, %v303_v61  ;;  %v430_v32 = vadd.f32 %v366_v2, %v238_v55  ;;  %v497_v52 = vld [vmem:[#allocation2 + $0x1d2] sm:$0xff] }
  0xa3   :  { %926 = vst.msk [vmem:[%s1784_s1 + $0xc0] sm:$0xff] %vm137_vm1, %v800_v19  ;;  %v802_v35 = vmul.f32 0.0625, %v746_v1  ;;  %v804_v50 = vmul.f32 0.0625, %v748_v43  ;;  %v694_v44 = vadd.f32 %v638_v24, %v1320_v56  ;;  %v801_v48 = vmul.f32 0.0625, %v745_v40  ;;  %v309_v19 = vld [vmem:[#allocation2 + $0x201] sm:$0xff]  ;;  %v310_v55 = vld [vmem:[#allocation2 + $0x211] sm:$0xff] }
  0xa4   :  { %v691_v12 = vadd.f32 %v635_v25, %v547_v26  ;;  %v749_v13 = vadd.f32 %v693_v60, %v1312_v51  ;;  %v431_v15 = vadd.f32 %v367_v4, %v239_v62  ;;  %v558_v17 = vadd.f32 %v494_v8, %v430_v32  ;;  %v240_v26 = vld [vmem:[#allocation2 + $0x1c8] sm:$0xff]  ;;  %v244_v25 = vld [vmem:[#allocation2 + $0x1f8] sm:$0xff] }
  0xa5   :  { %928 = vst.msk [vmem:[%s1784_s1 + $0xd0] sm:$0xff] %vm137_vm1, %v802_v35  ;;  %v639_v31 = vmul.f32 2.0, %v1342_v14  ;;  %v368_v21 = vmul.f32 2.0, %v304_v5  ;;  %v369_v30 = vmul.f32 2.0, %v305_v6  ;;  %v370_v28 = vmul.f32 2.0, %v306_v10  ;;  %v243_v1 = vld [vmem:[#allocation2 + $0x1e8] sm:$0xff] }
  0xa6   :  { %927 = vst.msk [vmem:[%s1784_s1 + $0xc8] sm:$0xff] %vm137_vm1, %v801_v48  ;;  %v747_v51 = vadd.f32 %v691_v12, %v1300_v37  ;;  %v805_v56 = vmul.f32 0.0625, %v749_v13  ;;  %v559_v22 = vadd.f32 %v495_v20, %v431_v15  ;;  %v750_v53 = vadd.f32 %v694_v44, %v558_v17  ;;  %v496_v37 = vld [vmem:[#allocation2 + $0x1ca] sm:$0xff]  ;;  %v500_v48 = vld [vmem:[#allocation2 + $0x1fa] sm:$0xff] }
  0xa7   :  { %930 = vst.msk [vmem:[%s1784_s1 + $0xe0] sm:$0xff] %vm137_vm1, %v804_v50  ;;  %v695_v34 = vadd.f32 %v639_v31, %v1323_v63  ;;  %v432_v38 = vadd.f32 %v368_v21, %v240_v26  ;;  %v640_v39 = vmul.f32 2.0, %v558_v17  ;;  %v433_v0 = vadd.f32 %v369_v30, %v241_v9  ;;  %v499_v5 = vld [vmem:[#allocation2 + $0x1ea] sm:$0xff]  ;;  %v311_v50 = vld [vmem:[#allocation2 + $0x219] sm:$0xff]  ;;  %v501_v21 = vld [vmem:[#allocation2 + $0x202] sm:$0xff] }
  0xa8   :  { %v803_v33 = vmul.f32 0.0625, %v747_v51  ;;  %931 = vst.msk [vmem:[%s1784_s1 + $0xe8] sm:$0xff] %vm137_vm1, %v805_v56  ;;  %v641_v54 = vmul.f32 2.0, %v559_v22  ;;  %v434_v45 = vadd.f32 %v370_v28, %v242_v41  ;;  %v806_v47 = vmul.f32 0.0625, %v750_v53  ;;  %v312_v32 = vld [vmem:[#allocation2 + $0x229] sm:$0xff]  ;;  %v245_v13 = vld [vmem:[#allocation2 + $0x200] sm:$0xff] }
  0xa9   :  { %v751_v27 = vadd.f32 %v695_v34, %v559_v22  ;;  %v560_v49 = vadd.f32 %v496_v37, %v432_v38  ;;  %v696_v63 = vadd.f32 %v640_v39, %v1334_v7  ;;  %v561_v57 = vadd.f32 %v497_v52, %v433_v0  ;;  %v246_v51 = vld [vmem:[#allocation2 + $0x210] sm:$0xff]  ;;  %v247_v38 = vld [vmem:[#allocation2 + $0x218] sm:$0xff]  ;;  %v248_v0 = vld [vmem:[#allocation2 + $0x228] sm:$0xff] }
  0xaa   :  { %929 = vst.msk [vmem:[%s1784_s1 + $0xd8] sm:$0xff] %vm137_vm1, %v803_v33  ;;  %v697_v59 = vadd.f32 %v641_v54, %v1342_v14  ;;  %v562_v61 = vadd.f32 %v498_v36, %v434_v45  ;;  %v371_v16 = vmul.f32 2.0, %v307_v23  ;;  %v372_v43 = vmul.f32 2.0, %v308_v46  ;;  %v313_v39 = vld [vmem:[#allocation2 + $0x231] sm:$0xff]  ;;  %v314_v54 = vld [vmem:[#allocation2 + $0x241] sm:$0xff] }
  0xab   :  { %932 = vst.msk [vmem:[%s1784_s1 + $0x110] sm:$0xff] %vm137_vm1, %v806_v47  ;;  %v807_v58 = vmul.f32 0.0625, %v751_v27  ;;  %v752_v7 = vadd.f32 %v696_v63, %v560_v49  ;;  %v642_v3 = vmul.f32 2.0, %v560_v49  ;;  %v643_v40 = vmul.f32 2.0, %v561_v57  ;;  %v502_v23 = vld [vmem:[#allocation2 + $0x212] sm:$0xff]  ;;  %v503_v47 = vld [vmem:[#allocation2 + $0x21a] sm:$0xff] }
  0xac   :  { %v753_v2 = vadd.f32 %v697_v59, %v561_v57  ;;  %v435_v24 = vadd.f32 %v371_v16, %v243_v1  ;;  %v644_v60 = vmul.f32 2.0, %v562_v61  ;;  %v436_v6 = vadd.f32 %v372_v43, %v244_v25  ;;  %v315_v1 = vld [vmem:[#allocation2 + $0x249] sm:$0xff]  ;;  %v250_v25 = vld [vmem:[#allocation2 + $0x240] sm:$0xff] }
  0xad   :  { %933 = vst.msk [vmem:[%s1784_s1 + $0x118] sm:$0xff] %vm137_vm1, %v807_v58  ;;  %v808_v14 = vmul.f32 0.0625, %v752_v7  ;;  %v698_v4 = vadd.f32 %v642_v3, %v558_v17  ;;  %v373_v35 = vmul.f32 2.0, %v309_v19  ;;  %v699_v10 = vadd.f32 %v643_v40, %v559_v22  ;;  %v249_v7 = vld [vmem:[#allocation2 + $0x230] sm:$0xff] }
  0xae   :  { %v809_v44 = vmul.f32 0.0625, %v753_v2  ;;  %v563_v62 = vadd.f32 %v499_v5, %v435_v24  ;;  %v700_v12 = vadd.f32 %v644_v60, %v560_v49  ;;  %v564_v15 = vadd.f32 %v500_v48, %v436_v6  ;;  %v316_v5 = vld [vmem:[#allocation2 + $0x259] sm:$0xff] }
  0xaf   :  { %934 = vst.msk [vmem:[%s1784_s1 + $0x120] sm:$0xff] %vm137_vm1, %v808_v14  ;;  %v754_v8 = vadd.f32 %v698_v4, %v562_v61  ;;  %v437_v20 = vadd.f32 %v373_v35, %v245_v13  ;;  %v374_v17 = vmul.f32 2.0, %v310_v55  ;;  %v375_v56 = vmul.f32 2.0, %v311_v50  ;;  %v505_v55 = vld [vmem:[#allocation2 + $0x232] sm:$0xff] }
  0xb0   :  { %935 = vst.msk [vmem:[%s1784_s1 + $0x128] sm:$0xff] %vm137_vm1, %v809_v44  ;;  %v755_v31 = vadd.f32 %v699_v10, %v563_v62  ;;  %v645_v30 = vmul.f32 2.0, %v563_v62  ;;  %v376_v22 = vmul.f32 2.0, %v312_v32  ;;  %v756_v28 = vadd.f32 %v700_v12, %v564_v15  ;;  %v506_v32 = vld [vmem:[#allocation2 + $0x242] sm:$0xff] }
  0xb1   :  { %v810_v26 = vmul.f32 0.0625, %v754_v8  ;;  %v565_v53 = vadd.f32 %v501_v21, %v437_v20  ;;  %v438_v34 = vadd.f32 %v374_v17, %v246_v51  ;;  %v646_v33 = vmul.f32 2.0, %v564_v15  ;;  %v251_v8 = vld [vmem:[#allocation2 + $0x248] sm:$0xff] }
  0xb2   :  { %v811_v9 = vmul.f32 0.0625, %v755_v31  ;;  %v701_v41 = vadd.f32 %v645_v30, %v561_v57  ;;  %v439_v37 = vadd.f32 %v375_v56, %v247_v38  ;;  %v812_v45 = vmul.f32 0.0625, %v756_v28  ;;  %v504_v57 = vld [vmem:[#allocation2 + $0x22a] sm:$0xff] }
  0xb3   :  { %936 = vst.msk [vmem:[%s1784_s1 + $0x130] sm:$0xff] %vm137_vm1, %v810_v26  ;;  %v566_v46 = vadd.f32 %v502_v23, %v438_v34  ;;  %v647_v27 = vmul.f32 2.0, %v565_v53  ;;  %v440_v49 = vadd.f32 %v376_v22, %v248_v0  ;;  %v702_v52 = vadd.f32 %v646_v33, %v562_v61  ;;  %v507_v17 = vld [vmem:[#allocation2 + $0x24a] sm:$0xff]  ;;  %v252_v22 = vld [vmem:[#allocation2 + $0x258] sm:$0xff] }
  0xb4   :  { %937 = vst.msk [vmem:[%s1784_s1 + $0x138] sm:$0xff] %vm137_vm1, %v811_v9  ;;  %v757_v63 = vadd.f32 %v701_v41, %v565_v53  ;;  %v567_v36 = vadd.f32 %v503_v47, %v439_v37  ;;  %v377_v59 = vmul.f32 2.0, %v313_v39  ;;  %v378_v3 = vmul.f32 2.0, %v314_v54  ;;  %v318_v30 = vld [vmem:[#allocation2 + $0x271] sm:$0xff]  ;;  %v253_v41 = vld [vmem:[#allocation2 + $0x260] sm:$0xff]  ;;  %v320_v23 = vld [vmem:[#allocation2 + $0x289] sm:$0xff] }
  0xb5   :  { %938 = vst.msk [vmem:[%s1784_s1 + $0x140] sm:$0xff] %vm137_vm1, %v812_v45  ;;  %v703_v16 = vadd.f32 %v647_v27, %v563_v62  ;;  %v568_v19 = vadd.f32 %v504_v57, %v440_v49  ;;  %v648_v58 = vmul.f32 2.0, %v566_v46  ;;  %v758_v2 = vadd.f32 %v702_v52, %v566_v46  ;;  %v317_v62 = vld [vmem:[#allocation2 + $0x261] sm:$0xff]  ;;  %v321_v33 = vld [vmem:[#allocation2 + $0x291] sm:$0xff] }
  0xb6   :  { %v813_v43 = vmul.f32 0.0625, %v757_v63  ;;  %v441_v24 = vadd.f32 %v377_v59, %v249_v7  ;;  %v649_v40 = vmul.f32 2.0, %v567_v36  ;;  %v442_v14 = vadd.f32 %v378_v3, %v250_v25  ;;  %v508_v0 = vld [vmem:[#allocation2 + $0x25a] sm:$0xff]  ;;  %v509_v49 = vld [vmem:[#allocation2 + $0x262] sm:$0xff]  ;;  %v254_v52 = vld [vmem:[#allocation2 + $0x270] sm:$0xff] }
  0xb7   :  { %v759_v61 = vadd.f32 %v703_v16, %v567_v36  ;;  %v704_v60 = vadd.f32 %v648_v58, %v564_v15  ;;  %v650_v4 = vmul.f32 2.0, %v568_v19  ;;  %v814_v6 = vmul.f32 0.0625, %v758_v2  ;;  %v255_v2 = vld [vmem:[#allocation2 + $0x278] sm:$0xff] }
  0xb8   :  { %939 = vst.msk [vmem:[%s1784_s1 + $0x148] sm:$0xff] %vm137_vm1, %v813_v43  ;;  %v569_v35 = vadd.f32 %v505_v55, %v441_v24  ;;  %v705_v50 = vadd.f32 %v649_v40, %v565_v53  ;;  %v379_v44 = vmul.f32 2.0, %v315_v1  ;;  %v570_v12 = vadd.f32 %v506_v32, %v442_v14  ;;  %v319_v53 = vld [vmem:[#allocation2 + $0x279] sm:$0xff]  ;;  %v256_v24 = vld [vmem:[#allocation2 + $0x288] sm:$0xff]  ;;  %v257_v55 = vld [vmem:[#allocation2 + $0x290] sm:$0xff] }
  0xb9   :  { %v815_v10 = vmul.f32 0.0625, %v759_v61  ;;  %v760_v48 = vadd.f32 %v704_v60, %v568_v19  ;;  %v706_v13 = vadd.f32 %v650_v4, %v566_v46  ;;  %940 = vst.msk [vmem:[%s1784_s1 + $0x150] sm:$0xff] %vm137_vm1, %v814_v6  ;;  %v380_v21 = vmul.f32 2.0, %v316_v5  ;;  %v510_v1 = vld [vmem:[#allocation2 + $0x272] sm:$0xff]  ;;  %v322_v14 = vld [vmem:[#allocation2 + $0x2a1] sm:$0xff] }
  0xba   :  { %v761_v15 = vadd.f32 %v705_v50, %v569_v35  ;;  %v443_v20 = vadd.f32 %v379_v44, %v251_v8  ;;  %v651_v31 = vmul.f32 2.0, %v569_v35  ;;  %v652_v26 = vmul.f32 2.0, %v570_v12  ;;  %v511_v50 = vld [vmem:[#allocation2 + $0x27a] sm:$0xff]  ;;  %v323_v8 = vld [vmem:[#allocation2 + $0x2a9] sm:$0xff] }
  0xbb   :  { %941 = vst.msk [vmem:[%s1784_s1 + $0x158] sm:$0xff] %vm137_vm1, %v815_v10  ;;  %v816_v51 = vmul.f32 0.0625, %v760_v48  ;;  %v762_v56 = vadd.f32 %v706_v13, %v570_v12  ;;  %v381_v28 = vmul.f32 2.0, %v317_v62  ;;  %v444_v9 = vadd.f32 %v380_v21, %v252_v22  ;;  %v513_v13 = vld [vmem:[#allocation2 + $0x292] sm:$0xff] }
  0xbc   :  { %v817_v34 = vmul.f32 0.0625, %v761_v15  ;;  %v571_v38 = vadd.f32 %v507_v17, %v443_v20  ;;  %v707_v39 = vadd.f32 %v651_v31, %v567_v36  ;;  %v708_v54 = vadd.f32 %v652_v26, %v568_v19  ;;  %v324_v22 = vld [vmem:[#allocation2 + $0x2b9] sm:$0xff] }
  0xbd   :  { %942 = vst.msk [vmem:[%s1784_s1 + $0x160] sm:$0xff] %vm137_vm1, %v816_v51  ;;  %v818_v37 = vmul.f32 0.0625, %v762_v56  ;;  %v445_v45 = vadd.f32 %v381_v28, %v253_v41  ;;  %v382_v46 = vmul.f32 2.0, %v318_v30  ;;  %v572_v27 = vadd.f32 %v508_v0, %v444_v9  ;;  %v258_v51 = vld [vmem:[#allocation2 + $0x2a0] sm:$0xff] }
  0xbe   :  { %943 = vst.msk [vmem:[%s1784_s1 + $0x168] sm:$0xff] %vm137_vm1, %v817_v34  ;;  %v763_v47 = vadd.f32 %v707_v39, %v571_v38  ;;  %v653_v63 = vmul.f32 2.0, %v571_v38  ;;  %v383_v36 = vmul.f32 2.0, %v319_v53  ;;  %v384_v16 = vmul.f32 2.0, %v320_v23  ;;  %v514_v23 = vld [vmem:[#allocation2 + $0x2a2] sm:$0xff] }
  0xbf   :  { %944 = vst.msk [vmem:[%s1784_s1 + $0x170] sm:$0xff] %vm137_vm1, %v818_v37  ;;  %v573_v57 = vadd.f32 %v509_v49, %v445_v45  ;;  %v446_v59 = vadd.f32 %v382_v46, %v254_v52  ;;  %v385_v19 = vmul.f32 2.0, %v321_v33  ;;  %v764_v7 = vadd.f32 %v708_v54, %v572_v27  ;;  %v259_v37 = vld [vmem:[#allocation2 + $0x2a8] sm:$0xff] }
  0xc0   :  { %v819_v58 = vmul.f32 0.0625, %v763_v47  ;;  %v709_v3 = vadd.f32 %v653_v63, %v569_v35  ;;  %v654_v43 = vmul.f32 2.0, %v572_v27  ;;  %v447_v25 = vadd.f32 %v383_v36, %v255_v2  ;;  %v512_v35 = vld [vmem:[#allocation2 + $0x28a] sm:$0xff]  ;;  %v260_v63 = vld [vmem:[#allocation2 + $0x2b8] sm:$0xff] }
  0xc1   :  { %v574_v40 = vadd.f32 %v510_v1, %v446_v59  ;;  %v655_v61 = vmul.f32 2.0, %v573_v57  ;;  %v448_v60 = vadd.f32 %v384_v16, %v256_v24  ;;  %v820_v4 = vmul.f32 0.0625, %v764_v7  ;;  %v515_v49 = vld [vmem:[#allocation2 + $0x2aa] sm:$0xff] }
  0xc2   :  { %945 = vst.msk [vmem:[%s1784_s1 + $0x178] sm:$0xff] %vm137_vm1, %v819_v58  ;;  %v765_v5 = vadd.f32 %v709_v3, %v573_v57  ;;  %v710_v6 = vadd.f32 %v654_v43, %v570_v12  ;;  %v449_v32 = vadd.f32 %v385_v19, %v257_v55  ;;  %v575_v44 = vadd.f32 %v511_v50, %v447_v25  ;;  %v261_v58 = vld [vmem:[#allocation2 + $0x2c0] sm:$0xff] }
  0xc3   :  { %v711_v62 = vadd.f32 %v655_v61, %v571_v38  ;;  %v576_v10 = vadd.f32 %v512_v35, %v448_v60  ;;  %v656_v48 = vmul.f32 2.0, %v574_v40  ;;  %946 = vst.msk [vmem:[%s1784_s1 + $0x180] sm:$0xff] %vm137_vm1, %v820_v4  ;;  %v386_v31 = vmul.f32 2.0, %v322_v14  ;;  %v325_v38 = vld [vmem:[#allocation2 + $0x2c1] sm:$0xff] }
  0xc4   :  { %v821_v15 = vmul.f32 0.0625, %v765_v5  ;;  %v766_v20 = vadd.f32 %v710_v6, %v574_v40  ;;  %v577_v17 = vadd.f32 %v513_v13, %v449_v32  ;;  %v657_v30 = vmul.f32 2.0, %v575_v44  ;;  %v516_v3 = vld [vmem:[#allocation2 + $0x2ba] sm:$0xff]  ;;  %v517_v61 = vld [vmem:[#allocation2 + $0x2c2] sm:$0xff] }
  0xc5   :  { %v767_v21 = vadd.f32 %v711_v62, %v575_v44  ;;  %v712_v12 = vadd.f32 %v656_v48, %v572_v27  ;;  %v658_v56 = vmul.f32 2.0, %v576_v10  ;;  %v450_v28 = vadd.f32 %v386_v31, %v258_v51 }
  0xc6   :  { %947 = vst.msk [vmem:[%s1784_s1 + $0x188] sm:$0xff] %vm137_vm1, %v821_v15  ;;  %v822_v26 = vmul.f32 0.0625, %v766_v20  ;;  %v387_v53 = vmul.f32 2.0, %v323_v8  ;;  %v659_v34 = vmul.f32 2.0, %v577_v17  ;;  %v713_v41 = vadd.f32 %v657_v30, %v573_v57 }
  0xc7   :  { %v823_v39 = vmul.f32 0.0625, %v767_v21  ;;  %v768_v9 = vadd.f32 %v712_v12, %v576_v10  ;;  %v714_v33 = vadd.f32 %v658_v56, %v574_v40  ;;  %v578_v0 = vadd.f32 %v514_v23, %v450_v28 }
  0xc8   :  { %948 = vst.msk [vmem:[%s1784_s1 + $0x190] sm:$0xff] %vm137_vm1, %v822_v26  ;;  %v451_v54 = vadd.f32 %v387_v53, %v259_v37  ;;  %v715_v45 = vadd.f32 %v659_v34, %v575_v44  ;;  %v388_v46 = vmul.f32 2.0, %v324_v22  ;;  %v769_v27 = vadd.f32 %v713_v41, %v577_v17 }
  0xc9   :  { %949 = vst.msk [vmem:[%s1784_s1 + $0x198] sm:$0xff] %vm137_vm1, %v823_v39  ;;  %v824_v47 = vmul.f32 0.0625, %v768_v9  ;;  %v389_v52 = vmul.f32 2.0, %v325_v38  ;;  %v664_v36 = vmul.f32 2.0, %v1499_v29  ;;  %v770_v57 = vadd.f32 %v714_v33, %v578_v0 }
  0xca   :  { %v579_v59 = vadd.f32 %v515_v49, %v451_v54  ;;  %v452_v16 = vadd.f32 %v388_v46, %v260_v63  ;;  %v660_v19 = vmul.f32 2.0, %v578_v0  ;;  %v825_v7 = vmul.f32 0.0625, %v769_v27 }
  0xcb   :  { %950 = vst.msk [vmem:[%s1784_s1 + $0x1a0] sm:$0xff] %vm137_vm1, %v824_v47  ;;  %v453_v1 = vadd.f32 %v389_v52, %v261_v58  ;;  %v665_v43 = vmul.f32 2.0, %v1506_v18  ;;  %v826_v2 = vmul.f32 0.0625, %v770_v57 }
  0xcc   :  { %v771_v24 = vadd.f32 %v715_v45, %v579_v59  ;;  %v580_v40 = vadd.f32 %v516_v3, %v452_v16  ;;  %v716_v25 = vadd.f32 %v660_v19, %v576_v10  ;;  %951 = vst.msk [vmem:[%s1784_s1 + $0x1a8] sm:$0xff] %vm137_vm1, %v825_v7  ;;  %v661_v55 = vmul.f32 2.0, %v579_v59 }
  0xcd   :  { %v581_v60 = vadd.f32 %v517_v61, %v453_v1  ;;  %952 = vst.msk [vmem:[%s1784_s1 + $0x1b0] sm:$0xff] %vm137_vm1, %v826_v2 }
  0xce   :  { %v827_v14 = vmul.f32 0.0625, %v771_v24  ;;  %v772_v4 = vadd.f32 %v716_v25, %v580_v40  ;;  %v662_v5 = vmul.f32 2.0, %v580_v40  ;;  %v720_v6 = vadd.f32 %v664_v36, %v580_v40 }
  0xcf   :  { %v717_v50 = vadd.f32 %v661_v55, %v577_v17  ;;  %v663_v35 = vmul.f32 2.0, %v581_v60  ;;  %v721_v32 = vadd.f32 %v665_v43, %v581_v60 }
  0xd0   :  { %953 = vst.msk [vmem:[%s1784_s1 + $0x1b8] sm:$0xff] %vm137_vm1, %v827_v14  ;;  %v828_v44 = vmul.f32 0.0625, %v772_v4  ;;  %v718_v62 = vadd.f32 %v662_v5, %v578_v0  ;;  %v776_v10 = vadd.f32 %v720_v6, %v1516_v42 }
  0xd1   :  { %v773_v48 = vadd.f32 %v717_v50, %v581_v60  ;;  %v719_v13 = vadd.f32 %v663_v35, %v579_v59  ;;  %v777_v8 = vadd.f32 %v721_v32, %v1525_v11 }
  0xd2   :  { %954 = vst.msk [vmem:[%s1784_s1 + $0x1c0] sm:$0xff] %vm137_vm1, %v828_v44  ;;  %v774_v15 = vadd.f32 %v718_v62, %v1499_v29  ;;  %v832_v20 = vmul.f32 0.0625, %v776_v10 }
  0xd3   :  { %v829_v17 = vmul.f32 0.0625, %v773_v48  ;;  %v775_v31 = vadd.f32 %v719_v13, %v1506_v18  ;;  %v833_v42 = vmul.f32 0.0625, %v777_v8 }
  0xd4   :  { %v830_v21 = vmul.f32 0.0625, %v774_v15  ;;  %958 = vst.msk [vmem:[%s1784_s1 + $0x1e0] sm:$0xff] %vm137_vm1, %v832_v20 }
  0xd5   :  { %955 = vst.msk [vmem:[%s1784_s1 + $0x1c8] sm:$0xff] %vm137_vm1, %v829_v17  ;;  %v831_v11 = vmul.f32 0.0625, %v775_v31 }
  0xd6   :  { %956 = vst.msk [vmem:[%s1784_s1 + $0x1d0] sm:$0xff] %vm137_vm1, %v830_v21 }
  0xd7   :  { %957 = vst.msk [vmem:[%s1784_s1 + $0x1d8] sm:$0xff] %vm137_vm1, %v831_v11 }
  0xd8   :  { %959 = vst.msk [vmem:[%s1784_s1 + $0x1e8] sm:$0xff] %vm137_vm1, %v833_v42 }

</bundles_post_ra>
